<compile_context>
chip_gen: v7x
topology: tpu7x:2x2x1
jax: 0.10.0
libtpu: 0.0.40
codegen_flags: <defaults>
</compile_context>

<pallas_src>
import functools

import jax
import jax.numpy as jnp
from jax import lax
from jax.experimental import pallas as pl
from jax.experimental.pallas import tpu as pltpu

# murmur3 fmix32 constants, wrapped to signed int32.
_FMIX_C1 = 0x85EBCA6B - (1 << 32)
_FMIX_C2 = 0xC2B2AE35 - (1 << 32)


def _fmix32(x):
    """murmur3 finalizer: avalanches int32 ids into uniform bits."""
    x = x ^ lax.shift_right_logical(x, 16)
    x = x * jnp.int32(_FMIX_C1)
    x = x ^ lax.shift_right_logical(x, 13)
    x = x * jnp.int32(_FMIX_C2)
    x = x ^ lax.shift_right_logical(x, 16)
    return x


def _proj_relu_dropout_kernel(seed_ref, x_ref, w_ref, b_ref, o_ref, *, p):
    """One (tm, E) output tile: (tm, C) x (C, E) matmul + bias + ReLU + dropout.

    x_ref: (tm, C)  bf16 lane-dense feature rows (flattened B*HW)
    w_ref: (C, E)   bf16 projector weight (grid-invariant, single-buffered)
    b_ref: (1, E)   f32 bias (grid-invariant, single-buffered)
    o_ref: (tm, E)  f32 output tile
    """
    mi = pl.program_id(0)

    # Standard (M, K) x (K, N) MXU matmul, f32 accumulation.
    acc = jnp.dot(x_ref[...], w_ref[...], preferred_element_type=jnp.float32)
    acc = acc + b_ref[...]            # (1, E) broadcasts over rows
    acc = jnp.maximum(acc, 0.0)       # ReLU

    tm, e = acc.shape
    if p >= 1.0:
        acc = jnp.zeros_like(acc)     # nn.Dropout(p=1) zeros everything
    elif p > 0.0:
        # Training-mode dropout: two-stage integer-hash mask (no wide product,
        # so no int32 overflow for large B*HW*E) + integer threshold compare.
        row = lax.broadcasted_iota(jnp.int32, (tm, e), 0)
        col = lax.broadcasted_iota(jnp.int32, (tm, e), 1)
        grow = mi * tm + row                              # global row index
        h = _fmix32(_fmix32(grow ^ seed_ref[0]) ^ col)
        r24 = lax.shift_right_logical(h, 8)               # uniform in [0, 2^24)
        keep = r24 >= jnp.int32(int(round(p * (1 << 24))))
        acc = jnp.where(keep, acc * jnp.float32(1.0 / (1.0 - p)), 0.0)

    o_ref[...] = acc.astype(o_ref.dtype)


def _choose_tile_m(m, target=256, align=16):
    """M-tile: <= target, divides m, bf16-sublane aligned; prefer >= 2 steps."""
    if m <= target:
        half = m // 2
        if m % 2 == 0 and half % align == 0:
            return half               # >= 2 grid steps (feeds both v7x cores)
        return m                      # single full-M block
    for cand in range(target - target % align, align - 1, -align):
        if m % cand == 0:
            return cand
    return m                          # fall back: single full-M block


def encoder_forward(features_nchw, w, b, seed, *, p=0.5, tile_m=None):
    """Pallas implementation of Encoder.forward given backbone features.

    features_nchw: (B, C, H, W) float32 -- frozen resnet50 trunk output (NCHW)
    w:             (C, E) projector weight (transposed vs. nn.Linear.weight)
    b:             (E,)   projector bias
    seed:          int32 scalar for the dropout mask
    returns:       (B, H*W, E) float32
    """
    B, C, H, W = features_nchw.shape
    E = w.shape[-1]
    HW = H * W
    M = B * HW
    assert 0.0 <= p <= 1.0
    assert C % 128 == 0 and E % 128 == 0, "channel/embed dims must be lane-aligned"

    # NCHW -> lane-dense (B*HW, C) bf16 slab.  The transpose is a cheap XLA op
    # in the wrapper; the kernel then feeds the MXU a standard (M,K)x(K,N)
    # matmul with K on lanes (no lane-padded blocks, no transposed-LHS feed).
    x2d = jnp.transpose(features_nchw, (0, 2, 3, 1)).reshape(M, C).astype(jnp.bfloat16)
    w_bf = w.astype(jnp.bfloat16)               # frozen weight: bf16 in HBM
    b2d = b.reshape(1, E).astype(jnp.float32)
    seed_arr = jnp.asarray([seed], dtype=jnp.int32)

    tm = _choose_tile_m(M) if tile_m is None else tile_m
    assert M % tm == 0 and (tm == M or tm % 8 == 0), "M tile must be sublane-aligned"
    grid = (M // tm,)

    kernel = functools.partial(_proj_relu_dropout_kernel, p=float(p))

    # Grid-invariant operands: block index never changes, so single-buffer.
    const_block = dict(pipeline_mode=pl.Buffered(1))

    out2d = pl.pallas_call(
        kernel,
        out_shape=jax.ShapeDtypeStruct((M, E), jnp.float32),
        grid_spec=pltpu.PrefetchScalarGridSpec(
            num_scalar_prefetch=1,
            grid=grid,
            in_specs=[
                # (tm, C) lane-dense feature rows
                pl.BlockSpec((tm, C), lambda mi, seed: (mi, 0)),
                # full (C, E) projector weight, single-buffered
                pl.BlockSpec((C, E), lambda mi, seed: (0, 0), **const_block),
                # (1, E) bias, single-buffered
                pl.BlockSpec((1, E), lambda mi, seed: (0, 0), **const_block),
            ],
            out_specs=pl.BlockSpec((tm, E), lambda mi, seed: (mi, 0)),
        ),
        compiler_params=pltpu.CompilerParams(
            dimension_semantics=("parallel",),
        ),
    )(seed_arr, x2d, w_bf, b2d)

    return out2d.reshape(B, HW, E)


if __name__ == "__main__":
    # Module-consistent small shapes: resnet50 trunk emits 2048 channels
    # (resnet.fc.in_features); projector maps 2048 -> embed_dim=512.
    B, C, H, W = 2, 2048, 4, 4
    EMBED_DIM = 512
    DROPOUT_P = 0.5

    key = jax.random.PRNGKey(0)
    k_feat, k_w, k_b = jax.random.split(key, 3)

    # Backbone features (stand-in for frozen resnet50 trunk output), NCHW.
    features = jax.random.normal(k_feat, (B, C, H, W), dtype=jnp.float32)

    # Deterministic projector params (nn.Linear(2048, 512) shapes).
    bound = 1.0 / (C ** 0.5)
    w = jax.random.uniform(k_w, (C, EMBED_DIM), jnp.float32, -bound, bound)
    b = jax.random.uniform(k_b, (EMBED_DIM,), jnp.float32, -bound, bound)

    # 1) Deterministic path (dropout off) vs. a pure-JAX f32 reference.
    out_det = jax.block_until_ready(encoder_forward(features, w, b, seed=0, p=0.0))
    x_nhwc = jnp.transpose(features, (0, 2, 3, 1)).reshape(B, H * W, C)
    ref = jnp.maximum(jnp.einsum("bmc,ce->bme", x_nhwc, w) + b, 0.0)
    max_err = float(jnp.max(jnp.abs(out_det - ref)))
    assert max_err < 5e-2, f"matmul mismatch vs reference: {max_err}"  # bf16 MXU drift

    # 2) Training path with dropout.
    out = jax.block_until_ready(encoder_forward(features, w, b, seed=0, p=DROPOUT_P))
    assert out.shape == (B, H * W, EMBED_DIM), out.shape
    assert out.dtype == jnp.float32
    assert bool(jnp.all(jnp.isfinite(out)))
    assert bool(jnp.all(out >= 0.0))  # ReLU (+ dropout zeroing) => non-negative
    zero_frac = float(jnp.mean(out == 0.0))
    assert 0.6 < zero_frac < 0.9, zero_frac  # ~0.5 (ReLU) + 0.5*0.5 (dropout) ≈ 0.75

    print("KERNEL_OK")
</pallas_src>

<mosaic_0001>
module attributes {stable_mosaic.version = 11 : i64} {
  func.func @_proj_relu_dropout_kernel(%arg0: i32, %arg1: memref<1xi32, #tpu.memory_space<smem>>, %arg2: memref<16x2048xbf16, #tpu.memory_space<vmem>>, %arg3: memref<2048x512xbf16, #tpu.memory_space<vmem>>, %arg4: memref<1x512xf32, #tpu.memory_space<vmem>>, %arg5: memref<16x512xf32, #tpu.memory_space<vmem>>) attributes {dimension_semantics = [#tpu.dimension_semantics<parallel>], iteration_bounds = array<i64: 2>, scalar_prefetch = 1 : i64, scratch_operands = 0 : i64, tpu.core_type = #tpu.core_type<tc>, window_params = [{transform_indices = @transform_0, window_bounds = array<i64: 16, 2048>}, {pipeline_mode = #tpu.pipeline_mode<synchronous>, transform_indices = @transform_1, window_bounds = array<i64: 2048, 512>}, {pipeline_mode = #tpu.pipeline_mode<synchronous>, transform_indices = @transform_2, window_bounds = array<i64: 1, 512>}, {transform_indices = @transform_3, window_bounds = array<i64: 16, 512>}]} {
    %c0 = arith.constant 0 : index
    %c0_0 = arith.constant 0 : index
    %0 = vector.load %arg2[%c0, %c0_0] : memref<16x2048xbf16, #tpu.memory_space<vmem>>, vector<16x2048xbf16>
    %c0_1 = arith.constant 0 : index
    %c0_2 = arith.constant 0 : index
    %1 = vector.load %arg3[%c0_1, %c0_2] : memref<2048x512xbf16, #tpu.memory_space<vmem>>, vector<2048x512xbf16>
    %cst = arith.constant dense<0.000000e+00> : vector<16x512xf32>
    %2 = tpu.matmul %0, %1, %cst {dimension_numbers = #tpu.dot_dimension_numbers<[1], [0], [0], [1], [0, 0, 1, 1], [], []>} : vector<16x2048xbf16>, vector<2048x512xbf16>, vector<16x512xf32> -> vector<16x512xf32>
    %c0_3 = arith.constant 0 : index
    %c0_4 = arith.constant 0 : index
    %3 = vector.load %arg4[%c0_3, %c0_4] : memref<1x512xf32, #tpu.memory_space<vmem>>, vector<1x512xf32>
    %4 = vector.broadcast %3 : vector<1x512xf32> to vector<16x512xf32>
    %5 = arith.addf %2, %4 : vector<16x512xf32>
    %cst_5 = arith.constant 0.000000e+00 : f32
    %6 = vector.broadcast %cst_5 : f32 to vector<16x512xf32>
    %7 = arith.maximumf %5, %6 : vector<16x512xf32>
    %c0_6 = arith.constant 0 : index
    %c0_7 = arith.constant 0 : index
    %8 = vector.load %arg5[%c0_6, %c0_7] : memref<16x512xf32, #tpu.memory_space<vmem>>, vector<16x512xf32>
    tpu.vector_store %arg5[%c0_6, %c0_7], %7 {strides = array<i32>} : memref<16x512xf32, #tpu.memory_space<vmem>>, vector<16x512xf32>,
    return
  }
  func.func @transform_0(%arg0: i32, %arg1: memref<1xi32, #tpu.memory_space<smem>>) -> (i32, i32) {
    %c0_i32 = arith.constant 0 : i32
    %c0_i32_0 = arith.constant 0 : i32
    return %arg0, %c0_i32 : i32, i32
  }
  func.func @transform_1(%arg0: i32, %arg1: memref<1xi32, #tpu.memory_space<smem>>) -> (i32, i32) {
    %c0_i32 = arith.constant 0 : i32
    %c0_i32_0 = arith.constant 0 : i32
    %c0_i32_1 = arith.constant 0 : i32
    return %c0_i32, %c0_i32_0 : i32, i32
  }
  func.func @transform_2(%arg0: i32, %arg1: memref<1xi32, #tpu.memory_space<smem>>) -> (i32, i32) {
    %c0_i32 = arith.constant 0 : i32
    %c0_i32_0 = arith.constant 0 : i32
    %c0_i32_1 = arith.constant 0 : i32
    return %c0_i32, %c0_i32_0 : i32, i32
  }
  func.func @transform_3(%arg0: i32, %arg1: memref<1xi32, #tpu.memory_space<smem>>) -> (i32, i32) {
    %c0_i32 = arith.constant 0 : i32
    %c0_i32_0 = arith.constant 0 : i32
    return %arg0, %c0_i32 : i32, i32
  }
}

</mosaic_0001>

<bundles_post_ra>
// kernel: tpu_custom_call.1
= control target key start
LH: loop header
LB: loop body
LE: loop exit
PB: predicated region body
PF: predicated region fallthrough
CT: control target
= control target key end

     0   :  { %10 = vsyncpa [#allocation5], 0  ;;  %s6192_s0 = inlined_call_operand.<no memory space> [shape: s32[1], index: 0, kind: input, shape index: {}]   ;;  %s6193_s1 = inlined_call_operand.hbm [shape: bf16[32,2048], index: 1, kind: input, shape index: {}]   ;;  %s6194_s2 = inlined_call_operand.hbm [shape: bf16[2048,512], index: 2, kind: input, shape index: {}]   ;;  %s6195_s3 = inlined_call_operand.hbm [shape: f32[1,512], index: 3, kind: input, shape index: {}]   ;;  %s6196_s4 = inlined_call_operand.hbm [shape: f32[32,512], index: 4, kind: output, shape index: {}]  }
   0x1   :  { %12 = vsyncpa [#allocation5 + $0x1], 0 }
   0x2   :  { %13 = vsyncpa [#allocation8], 0 }
   0x3   :  { %14 = vsyncpa [#allocation6], 0 }
   0x4   :  { %16 = vsyncpa [#allocation6 + $0x1], 0  ;;  %s5872_s15 = smov 0   ;;  %s5874_s0 = smov 0  }
   0x5   :  { %s5876_s16 = smov 0   ;;  %s5878_s17 = smov 0  }
   0x6 LB: > { %s5893_s18 = sadd.s32 4294967295, %s5835_s17   ;;  %s4222_s19 = sadd.s32 4294967294, %s5835_s17   ;;  %s5835_s17 = sphi %s5878_s17, %s6216_s17   ;;  %s5831_s16 = sphi %s5876_s16, %s6215_s16   ;;  %s5827_s0 = sphi %s5874_s0, %s6214_s0   ;;  %s5823_s15 = sphi %s5872_s15, %s6213_s15  }
   0x7   : > { %p42_p0 = scmp.ne.s32.totalorder %s5827_s0, %s5823_s15  ;;  %p6197_p1 = scmp.eq.s32.totalorder %s5893_s18, 0 }
   0x8   : > { %p114_p3 = scmp.eq.s32.totalorder %s4222_s19, 1  ;;  %p4223_p5 = scmp.ge.s32.totalorder %s5835_s17, 1 }
   0x9   : > { %p5902_p4 = por %p6197_p1, %p42_p0  ;;  %p121_p7 = scmp.lt.s32.totalorder %s5835_s17, 3 }
   0xa   : > { %p5907_p6 = por %p114_p3, %p42_p0  ;;  %s5837_s23 = smov [#allocation7]  }
   0xb   : > { %s6200_s20 = scalar_select %p5902_p4, 1, 0 }
   0xc   : > { %s6201_s21 = scalar_select %p5907_p6, 1, 0 }
   0xd   : > { %p5912_p8 = pnand %p4223_p5, %p121_p7  ;;  %s133_s24 = sshll.u32 %s5837_s23, 4  ;;  %s5916_s24 = int_to_ptr.vmem [resolvable:$true] %s133_s24 }
   0xe   : > { %s5838_s26 = smov [#allocation9]   ;;  %s5679_s30 = scalar_lea.hbm %s6194_s2, 65536 }
   0xf   : > { %p4850_p9 = pneg %p5912_p8  ;;  %s147_s27 = sshll.u32 %s5838_s26, 4  ;;  %s5927_s27 = int_to_ptr.vmem [resolvable:$true] %s147_s27 }
  0x10   : > { %p5680_p12 = scmp.ne.s32.totalorder %s6194_s2, %s5679_s30  ;;  %p5686_p5 = scmp.lt.u32.totalorder %s5679_s30, %s6194_s2 }
  0x11   : > { %p5923_p11 = pnand %p4850_p9, %p6197_p1 }
  0x13   : > { %p5681_p13 = pneg %p5923_p11 }
  0x15   : > { %p5682_p0 = pnand %p5681_p13, %p5680_p12 }
  0x17   : > { %p5683_p3 = pneg %p5682_p0 }
  0x19   : > { %p5688_p7 = pnand %p5686_p5, %p5683_p3 }
  0x1b   : > { %5691 = shalt.err (!%p5688_p7)
}
  0x1c   : > { %s5692_s9 = scalar_lea.vmem %s5916_s24, 65536  ;;  %p5700_p2 = scmp.lt.s32.totalorder %s5916_s24, %s5916_s24 }
  0x1d   : > { %p5693_p9 = scmp.ne.s32.totalorder %s5916_s24, %s5692_s9  ;;  %p5701_p12 = scmp.lt.s32.totalorder %s5692_s9, %s5692_s9 }
  0x1f   : > { %p5695_p10 = pnand %p5693_p9, %p5681_p13  ;;  %p5702_p0 = por %p5701_p12, %p5700_p2 }
  0x21   : > { %p5696_p1 = pneg %p5695_p10 }
  0x23   : > { %p5703_p6 = pnand %p5702_p0, %p5696_p1 }
  0x25   : > { %5706 = shalt.err (!%p5703_p6)
}
  0x26   : > { %s5839_s10 = smov 256   ;;  %s5840_s11 = smov 16  }
  0x27   : > { %4853 = dma.hbm_to_vmem [thread:$0]  (!%p5923_p11), %s6194_s2, 65536, %s5916_s24, [#allocation8], %s5839_s10, %s5839_s10, %s5840_s11  }
  0x28   : > { %s5707_s23 = scalar_lea.hbm %s6195_s3, 64 }
  0x29   : > { %p5708_p2 = scmp.ne.s32.totalorder %s6195_s3, %s5707_s23  ;;  %p5714_p10 = scmp.lt.u32.totalorder %s5707_s23, %s6195_s3 }
  0x2b   : > { %p5710_p1 = pnand %p5708_p2, %p5681_p13 }
  0x2d   : > { %p5711_p6 = pneg %p5710_p1 }
  0x2f   : > { %p5716_p3 = pnand %p5714_p10, %p5711_p6 }
  0x31   : > { %5719 = shalt.err (!%p5716_p3)
}
  0x32   : > { %s5720_s24 = scalar_lea.vmem %s5927_s27, 64  ;;  %p5728_p12 = scmp.lt.s32.totalorder %s5927_s27, %s5927_s27 }
  0x33   : > { %p5721_p5 = scmp.ne.s32.totalorder %s5927_s27, %s5720_s24  ;;  %p5729_p0 = scmp.lt.s32.totalorder %s5720_s24, %s5720_s24 }
  0x35   : > { %p5723_p7 = pnand %p5721_p5, %p5681_p13  ;;  %p5730_p2 = por %p5729_p0, %p5728_p12 }
  0x37   : > { %p5724_p9 = pneg %p5723_p7 }
  0x39   : > { %p5731_p1 = pnand %p5730_p2, %p5724_p9 }
  0x3b   : > { %5734 = shalt.err (!%p5731_p1)
}
  0x3c   : > { %4856 = dma.hbm_to_vmem [thread:$0]  (!%p5923_p11), %s6195_s3, 64, %s5927_s27, [#allocation8]  }
  0x3d   : > { %s5982_s7 = sadd.s32 1, %s5835_s17   ;;  %s29_s25 = sadd.s32 1, %s5831_s16 }
  0x3e   : > { %s26_s8 = ssub.s32 %s5835_s17, %s5982_s7  ;;  %p36_p13 = scmp.ne.s32.totalorder %s5831_s16, %s5827_s0 }
  0x3f   : > { %p27_p6 = scmp.eq.s32.totalorder %s26_s8, 0  ;;  %p37_p10 = scmp.eq.s32.totalorder %s5835_s17, 0 }
  0x40   : > { %p6204_p3 = scmp.eq.s32.totalorder %s5893_s18, 1  ;;  %p4867_p7 = scmp.lt.s32.totalorder %s5835_s17, 2 }
  0x41   : > { %s5998_s10 = scalar_select %p27_p6, %s5831_s16, %s29_s25  }
  0x42   : > { %p5992_p5 = por %p6204_p3, %p36_p13  ;;  %p38_p9 = por %p37_p10, %p36_p13 }
  0x43   : > { %s158_s11 = sand.u32 1, %s5831_s16   ;;  %s4771_s27 = sshll.u32 %s5835_s17, 11 }
  0x44   : > { %s6205_s9 = scalar_select %p5992_p5, 1, 0 }
  0x45   : > { %s4227_s12 = sshll.u32 %s158_s11, 7  ;;  %s6005_s19 = scalar_lea.hbm %s6193_s1, %s4771_s27 }
  0x46   : > { %s162_s23 = scalar_lea.vmem [#allocation4], %s4227_s12  ;;  %p6009_p11 = pnand %p4867_p7, %p38_p9 }
  0x47   : > { %s170_s26 = sshll.u32 %s162_s23, 4  ;;  %s6013_s29 = scalar_lea.sflag [#allocation5], %s158_s11  ;;  %s6007_s26 = int_to_ptr.vmem [resolvable:$true] %s170_s26 }
  0x48   : > { %s5735_s30 = scalar_lea.hbm %s6005_s19, 2048  ;;  %p5737_p0 = pneg %p6009_p11 }
  0x49   : > { %p5736_p12 = scmp.ne.s32.totalorder %s6005_s19, %s5735_s30  ;;  %s5740_s6 = scalar_lea.hbm %s6193_s1, 4096 }
  0x4a   : > { %p5741_p13 = scmp.lt.u32.totalorder %s6005_s19, %s6193_s1  ;;  %p5742_p6 = scmp.lt.u32.totalorder %s5740_s6, %s5735_s30 }
  0x4b   : > { %p5738_p2 = pnand %p5737_p0, %p5736_p12  ;;  %p5744_p3 = scmp.lt.u32.totalorder %s5735_s30, %s6005_s19 }
  0x4c   : > { %p5743_p10 = por %p5742_p6, %p5741_p13 }
  0x4d   : > { %p5739_p1 = pneg %p5738_p2 }
  0x4e   : > { %p5745_p7 = por %p5744_p3, %p5743_p10 }
  0x50   : > { %p5746_p9 = pnand %p5745_p7, %p5739_p1 }
  0x52   : > { %5749 = shalt.err (!%p5746_p9)
}
  0x53   : > { %s5750_s11 = scalar_lea.vmem %s6007_s26, 2048  ;;  %s5841_s12 = smov [#allocation4]  }
  0x54   : > { %p5751_p12 = scmp.ne.s32.totalorder %s6007_s26, %s5750_s11  ;;  %s5755_s27 = sshll.u32 %s5841_s12, 4  ;;  %s5756_s27 = int_to_ptr.vmem [resolvable:$false] %s5755_s27 }
  0x55   : > { %s5757_s13 = scalar_lea.vmem %s5756_s27, 4096  ;;  %p5758_p4 = scmp.lt.s32.totalorder %s6007_s26, %s5756_s27 }
  0x56   : > { %p5753_p2 = pnand %p5751_p12, %p5737_p0  ;;  %p5759_p13 = scmp.lt.s32.totalorder %s5757_s13, %s5750_s11 }
  0x58   : > { %p5754_p5 = pneg %p5753_p2  ;;  %p5760_p6 = por %p5759_p13, %p5758_p4 }
  0x5a   : > { %p5761_p10 = pnand %p5760_p6, %p5754_p5 }
  0x5c   : > { %5764 = shalt.err (!%p5761_p10)
}
  0x5d   : > { %s5842_s14 = smov 1024   ;;  %s5843_s23 = smov 64  }
  0x5e   : > { %4860 = dma.hbm_to_vmem [thread:$0]  (!%p6009_p11), %s6005_s19, 2048, %s6007_s26, %s6013_s29, %s5842_s14, %s5842_s14, %s5843_s23  }
  0x5f   : > { %182 = sbr.rel (%p5912_p8) target bundleno = 853 (0x355), region = 32  ;;  %s6044_s30 = sand.u32 (!%p5912_p8), 1, %s5827_s0  }
  0x60   : > { %s4232_s24 = sshll.u32 (!%p5912_p8), %s6044_s30, 7  ;;  %s185_s5 = scalar_lea.sflag (!%p5912_p8), [#allocation5], %s6044_s30 }
  0x61   : > { %s6048_s6 = scalar_lea.vmem (!%p5912_p8), [#allocation4], %s4232_s24  ;;  %p6207_p4 = scmp.ne.s32.totalorder (!%p5912_p8), %s6200_s20, 0 }
  0x66   : > { %5810 = dma.done.wait (%p6207_p4), %s185_s5, 2048  }
  0x67   : > { %5812 = vsyncadd (%p6207_p4), %s185_s5, 4294965248  ;;  %p6208_p5 = scmp.eq.s32.totalorder %s5893_s18, 0 }
  0x69   : > { %5814 = dma.done.wait (%p6208_p5), [#allocation8], 65600   ;;  %p6209_p8 = pmov %p6208_p5 }
  0x6a   : > { %v4911_v0 = vld [vmem:[#allocation7 + $0x4] ss:$16 sps:$4 sm:$0xff]   ;;  %v4913_v1 = vld [vmem:[#allocation7 + $0xc] ss:$16 sps:$4 sm:$0xff]   ;;  %v4915_v2 = vld [vmem:[#allocation7] ss:$16 sps:$4 sm:$0xff]  }
  0x6b   : > { %5816 = vsyncadd (%p6209_p8), [#allocation8], 4294901696  ;;  %3411 = vmatprep.subr.bf16.mxu0 %v4911_v0  ;;  %v4916_v3 = vld [vmem:[#allocation7 + $0x8] ss:$16 sps:$4 sm:$0xff]   ;;  %3755 = vmatprep.subr.bf16.mxu1 %v4913_v1  ;;  %v4917_v4 = vld [vmem:[#allocation7 + $0x24] ss:$16 sps:$4 sm:$0xff]  }
  0x6c   : > { %3412 = vmatpush1.bf16.msra.mxu0 %v4915_v2  ;;  %3756 = vmatpush1.bf16.msra.mxu1 %v4916_v3  ;;  %v4919_v5 = vld [vmem:[#allocation7 + $0x2c] ss:$16 sps:$4 sm:$0xff]   ;;  %v4921_v6 = vld [vmem:[#allocation7 + $0x20] ss:$16 sps:$4 sm:$0xff]   ;;  %v4922_v7 = vld [vmem:[#allocation7 + $0x28] ss:$16 sps:$4 sm:$0xff]  }
  0x6d   : > { %3413 = vmatprep.subr.bf16.mxu0 %v4917_v4  ;;  %3757 = vmatprep.subr.bf16.mxu1 %v4919_v5  ;;  %v4923_v8 = vld [vmem:[#allocation7 + $0x44] ss:$16 sps:$4 sm:$0xff]   ;;  %v4925_v9 = vld [vmem:[#allocation7 + $0x4c] ss:$16 sps:$4 sm:$0xff]   ;;  %v4927_v10 = vld [vmem:[#allocation7 + $0x40] ss:$16 sps:$4 sm:$0xff]  }
  0x6e   : > { %v4928_v11 = vld [vmem:[#allocation7 + $0x48] ss:$16 sps:$4 sm:$0xff]   ;;  %v4929_v12 = vld [vmem:[#allocation7 + $0x64] ss:$16 sps:$4 sm:$0xff]   ;;  %v4931_v13 = vld [vmem:[#allocation7 + $0x6c] ss:$16 sps:$4 sm:$0xff]  }
  0x6f   : > { %v4933_v14 = vld [vmem:[#allocation7 + $0x60] ss:$16 sps:$4 sm:$0xff]   ;;  %v4934_v15 = vld [vmem:[#allocation7 + $0x68] ss:$16 sps:$4 sm:$0xff]   ;;  %v4935_v16 = vld [vmem:[#allocation7 + $0x84] ss:$16 sps:$4 sm:$0xff]  }
  0x70   : > { %3414 = vmatpush1.bf16.msra.mxu0 %v4921_v6  ;;  %3758 = vmatpush1.bf16.msra.mxu1 %v4922_v7  ;;  %v4937_v17 = vld [vmem:[#allocation7 + $0x8c] ss:$16 sps:$4 sm:$0xff]   ;;  %v4939_v18 = vld [vmem:[#allocation7 + $0x80] ss:$16 sps:$4 sm:$0xff]   ;;  %v4940_v19 = vld [vmem:[#allocation7 + $0x88] ss:$16 sps:$4 sm:$0xff]  }
  0x71   : > { %3415 = vmatprep.subr.bf16.mxu0 %v4923_v8  ;;  %3759 = vmatprep.subr.bf16.mxu1 %v4925_v9  ;;  %v4941_v20 = vld [vmem:[#allocation7 + $0xa4] ss:$16 sps:$4 sm:$0xff]   ;;  %v4943_v21 = vld [vmem:[#allocation7 + $0xac] ss:$16 sps:$4 sm:$0xff]   ;;  %v4945_v22 = vld [vmem:[#allocation7 + $0xa0] ss:$16 sps:$4 sm:$0xff]  }
  0x72   : > { %v4946_v23 = vld [vmem:[#allocation7 + $0xa8] ss:$16 sps:$4 sm:$0xff]   ;;  %v4947_v24 = vld [vmem:[#allocation7 + $0xc4] ss:$16 sps:$4 sm:$0xff]   ;;  %v4949_v25 = vld [vmem:[#allocation7 + $0xcc] ss:$16 sps:$4 sm:$0xff]  }
  0x73   : > { %v4951_v26 = vld [vmem:[#allocation7 + $0xc0] ss:$16 sps:$4 sm:$0xff]   ;;  %v4952_v27 = vld [vmem:[#allocation7 + $0xc8] ss:$16 sps:$4 sm:$0xff]   ;;  %v4953_v28 = vld [vmem:[#allocation7 + $0xe4] ss:$16 sps:$4 sm:$0xff]  }
  0x74   : > { %3416 = vmatpush1.bf16.msra.mxu0 %v4927_v10  ;;  %3760 = vmatpush1.bf16.msra.mxu1 %v4928_v11  ;;  %v4955_v29 = vld [vmem:[#allocation7 + $0xec] ss:$16 sps:$4 sm:$0xff]   ;;  %v4957_v30 = vld [vmem:[#allocation7 + $0xe0] ss:$16 sps:$4 sm:$0xff]   ;;  %v4958_v31 = vld [vmem:[#allocation7 + $0xe8] ss:$16 sps:$4 sm:$0xff]  }
  0x75   : > { %3417 = vmatprep.subr.bf16.mxu0 %v4929_v12  ;;  %3761 = vmatprep.subr.bf16.mxu1 %v4931_v13  ;;  %v4959_v32 = vld [vmem:[#allocation7 + $0x104] ss:$16 sps:$4 sm:$0xff]   ;;  %v4961_v33 = vld [vmem:[#allocation7 + $0x10c] ss:$16 sps:$4 sm:$0xff]   ;;  %v4963_v34 = vld [vmem:[#allocation7 + $0x100] ss:$16 sps:$4 sm:$0xff]  }
  0x76   : > { %v4964_v35 = vld [vmem:[#allocation7 + $0x108] ss:$16 sps:$4 sm:$0xff]   ;;  %v4965_v36 = vld [vmem:[#allocation7 + $0x124] ss:$16 sps:$4 sm:$0xff]   ;;  %v4967_v37 = vld [vmem:[#allocation7 + $0x12c] ss:$16 sps:$4 sm:$0xff]  }
  0x77   : > { %v4969_v38 = vld [vmem:[#allocation7 + $0x120] ss:$16 sps:$4 sm:$0xff]   ;;  %v4970_v39 = vld [vmem:[#allocation7 + $0x128] ss:$16 sps:$4 sm:$0xff]   ;;  %v4971_v40 = vld [vmem:[#allocation7 + $0x144] ss:$16 sps:$4 sm:$0xff]  }
  0x78   : > { %3418 = vmatpush1.bf16.msra.mxu0 %v4933_v14  ;;  %3762 = vmatpush1.bf16.msra.mxu1 %v4934_v15  ;;  %v4973_v41 = vld [vmem:[#allocation7 + $0x14c] ss:$16 sps:$4 sm:$0xff]   ;;  %v4975_v42 = vld [vmem:[#allocation7 + $0x140] ss:$16 sps:$4 sm:$0xff]   ;;  %v4976_v43 = vld [vmem:[#allocation7 + $0x148] ss:$16 sps:$4 sm:$0xff]  }
  0x79   : > { %3419 = vmatprep.subr.bf16.mxu0 %v4935_v16  ;;  %3763 = vmatprep.subr.bf16.mxu1 %v4937_v17  ;;  %v4977_v44 = vld [vmem:[#allocation7 + $0x164] ss:$16 sps:$4 sm:$0xff]   ;;  %v4979_v45 = vld [vmem:[#allocation7 + $0x16c] ss:$16 sps:$4 sm:$0xff]   ;;  %v4981_v48 = vld [vmem:[#allocation7 + $0x160] ss:$16 sps:$4 sm:$0xff]  }
  0x7a   : > { %v221_v46 = vld [vmem:[%s6048_s6] sm:$0xff]  ;;  %v4982_v49 = vld [vmem:[#allocation7 + $0x168] ss:$16 sps:$4 sm:$0xff]   ;;  %v4985_v52 = vld [vmem:[#allocation7 + $0x18c] ss:$16 sps:$4 sm:$0xff]   ;;  %s4235_s20 = sshll.u32 %s6044_s30, 6 }
  0x7b   : > { %v229_v47 = vld [vmem:[%s6048_s6 + $0x40] sm:$0xff]  ;;  %v4988_v54 = vld [vmem:[#allocation7 + $0x188] ss:$16 sps:$4 sm:$0xff]   ;;  %v4991_v56 = vld [vmem:[#allocation7 + $0x1ac] ss:$16 sps:$4 sm:$0xff]   ;;  %s6131_s22 = scalar_lea.vmem [#allocation10], %s4235_s20 }
  0x7c   : > { %3420 = vmatpush1.bf16.msra.mxu0 %v4939_v18  ;;  %3764 = vmatpush1.bf16.msra.mxu1 %v4940_v19  ;;  %v4237_v50 = vcombine.high %v221_v46, %v229_v47  ;;  %v4983_v51 = vld [vmem:[#allocation7 + $0x184] ss:$16 sps:$4 sm:$0xff]   ;;  %v4987_v53 = vld [vmem:[#allocation7 + $0x180] ss:$16 sps:$4 sm:$0xff]   ;;  %v4994_v58 = vld [vmem:[#allocation7 + $0x1a8] ss:$16 sps:$4 sm:$0xff]   ;;  %v4236_v5 = vcombine.low %v221_v46, %v229_v47 }
  0x7d   : > { %3421 = vmatprep.subr.bf16.mxu0 %v4941_v20  ;;  %3765 = vmatprep.subr.bf16.mxu1 %v4943_v21  ;;  %v4989_v55 = vld [vmem:[#allocation7 + $0x1a4] ss:$16 sps:$4 sm:$0xff]   ;;  %v4993_v57 = vld [vmem:[#allocation7 + $0x1a0] ss:$16 sps:$4 sm:$0xff]   ;;  %v4997_v60 = vld [vmem:[#allocation7 + $0x1cc] ss:$16 sps:$4 sm:$0xff]  }
  0x7e   : > { %3443 = vmatprep.mubr.bf16.mxu0 %v4237_v50  ;;  %3787 = vmatprep.mubr.bf16.mxu1 %v4237_v50  ;;  %v4995_v59 = vld [vmem:[#allocation7 + $0x1c4] ss:$16 sps:$4 sm:$0xff]   ;;  %v4999_v61 = vld [vmem:[#allocation7 + $0x1c0] ss:$16 sps:$4 sm:$0xff]   ;;  %v5000_v62 = vld [vmem:[#allocation7 + $0x1c8] ss:$16 sps:$4 sm:$0xff]  }
  0x7f   : > { %v5001_v63 = vld [vmem:[#allocation7 + $0x1e4] ss:$16 sps:$4 sm:$0xff]   ;;  %v5003_v0 = vld [vmem:[#allocation7 + $0x1ec] ss:$16 sps:$4 sm:$0xff]   ;;  %v5005_v1 = vld [vmem:[#allocation7 + $0x1e0] ss:$16 sps:$4 sm:$0xff]  }
  0x80   : > { %3422 = vmatpush1.bf16.msra.mxu0 %v4945_v22  ;;  %3766 = vmatpush1.bf16.msra.mxu1 %v4946_v23  ;;  %v5006_v2 = vld [vmem:[#allocation7 + $0x1e8] ss:$16 sps:$4 sm:$0xff]   ;;  %v5009_v3 = vld [vmem:[#allocation7 + $0x204] ss:$16 sps:$4 sm:$0xff]   ;;  %v5012_v4 = vld [vmem:[#allocation7 + $0x20c] ss:$16 sps:$4 sm:$0xff]  }
  0x81   : > { %3423 = vmatprep.subr.bf16.mxu0 %v4947_v24  ;;  %3767 = vmatprep.subr.bf16.mxu1 %v4949_v25  ;;  %v5007_v6 = vld [vmem:[#allocation7 + $0x200] ss:$16 sps:$4 sm:$0xff]   ;;  %v5010_v7 = vld [vmem:[#allocation7 + $0x208] ss:$16 sps:$4 sm:$0xff]   ;;  %v5015_v8 = vld [vmem:[#allocation7 + $0x224] ss:$16 sps:$4 sm:$0xff]  }
  0x82   : > { %v5018_v9 = vld [vmem:[#allocation7 + $0x22c] ss:$16 sps:$4 sm:$0xff]   ;;  %v5013_v10 = vld [vmem:[#allocation7 + $0x220] ss:$16 sps:$4 sm:$0xff]   ;;  %v5016_v11 = vld [vmem:[#allocation7 + $0x228] ss:$16 sps:$4 sm:$0xff]  }
  0x83   : > { %v5021_v12 = vld [vmem:[#allocation7 + $0x244] ss:$16 sps:$4 sm:$0xff]   ;;  %v5024_v13 = vld [vmem:[#allocation7 + $0x24c] ss:$16 sps:$4 sm:$0xff]   ;;  %v5019_v14 = vld [vmem:[#allocation7 + $0x240] ss:$16 sps:$4 sm:$0xff]  }
  0x84   : > { %3424 = vmatpush1.bf16.msra.mxu0 %v4951_v26  ;;  %3768 = vmatpush1.bf16.msra.mxu1 %v4952_v27  ;;  %v5022_v15 = vld [vmem:[#allocation7 + $0x248] ss:$16 sps:$4 sm:$0xff]   ;;  %v5027_v16 = vld [vmem:[#allocation7 + $0x264] ss:$16 sps:$4 sm:$0xff]   ;;  %v5030_v17 = vld [vmem:[#allocation7 + $0x26c] ss:$16 sps:$4 sm:$0xff]  }
  0x85   : > { %3425 = vmatprep.subr.bf16.mxu0 %v4953_v28  ;;  %3769 = vmatprep.subr.bf16.mxu1 %v4955_v29  ;;  %v5025_v18 = vld [vmem:[#allocation7 + $0x260] ss:$16 sps:$4 sm:$0xff]   ;;  %v5028_v19 = vld [vmem:[#allocation7 + $0x268] ss:$16 sps:$4 sm:$0xff]   ;;  %v5033_v20 = vld [vmem:[#allocation7 + $0x284] ss:$16 sps:$4 sm:$0xff]  }
  0x86   : > { %v5036_v21 = vld [vmem:[#allocation7 + $0x28c] ss:$16 sps:$4 sm:$0xff]   ;;  %v5031_v22 = vld [vmem:[#allocation7 + $0x280] ss:$16 sps:$4 sm:$0xff]   ;;  %v5034_v23 = vld [vmem:[#allocation7 + $0x288] ss:$16 sps:$4 sm:$0xff]  }
  0x87   : > { %v5039_v24 = vld [vmem:[#allocation7 + $0x2a4] ss:$16 sps:$4 sm:$0xff]   ;;  %v5042_v25 = vld [vmem:[#allocation7 + $0x2ac] ss:$16 sps:$4 sm:$0xff]   ;;  %v5037_v26 = vld [vmem:[#allocation7 + $0x2a0] ss:$16 sps:$4 sm:$0xff]  }
  0x88   : > { %3426 = vmatpush1.bf16.msra.mxu0 %v4957_v30  ;;  %3770 = vmatpush1.bf16.msra.mxu1 %v4958_v31  ;;  %v5040_v27 = vld [vmem:[#allocation7 + $0x2a8] ss:$16 sps:$4 sm:$0xff]   ;;  %v5045_v28 = vld [vmem:[#allocation7 + $0x2c4] ss:$16 sps:$4 sm:$0xff]   ;;  %v5048_v29 = vld [vmem:[#allocation7 + $0x2cc] ss:$16 sps:$4 sm:$0xff]  }
  0x89   : > { %3427 = vmatprep.subr.bf16.mxu0 %v4959_v32  ;;  %3771 = vmatprep.subr.bf16.mxu1 %v4961_v33  ;;  %v6061_v30 = vld [vmem:[%s6048_s6 + $0x8] sm:$0xff]  ;;  %v5043_v32 = vld [vmem:[#allocation7 + $0x2c0] ss:$16 sps:$4 sm:$0xff]   ;;  %v5069_v47 = vld [vmem:[#allocation7 + $0x344] ss:$16 sps:$4 sm:$0xff]   ;;  %s4130_s19 = sshll.u32 %s6131_s22, 4  ;;  %s6135_s19 = int_to_ptr.vmem [resolvable:$true] %s4130_s19 }
  0x8a   : > { %v6064_v31 = vld [vmem:[%s6048_s6 + $0x48] sm:$0xff]  ;;  %s4773_s26 = sshll.u32 %s5893_s18, 10  ;;  %s4116_s25 = scalar_lea.sflag [#allocation6], %s6044_s30 }
  0x8b   : > { %v5046_v33 = vld [vmem:[#allocation7 + $0x2c8] ss:$16 sps:$4 sm:$0xff]   ;;  %s6142_s29 = scalar_lea.hbm %s6196_s4, %s4773_s26  ;;  %s5765_s8 = scalar_lea.vmem %s6135_s19, 1024 }
  0x8c   : > { %3428 = vmatpush1.bf16.msra.mxu0 %v4963_v34  ;;  %3772 = vmatpush1.bf16.msra.mxu1 %v4964_v35  ;;  %v4239_v34 = vcombine.high %v6061_v30, %v6064_v31  ;;  %v5051_v35 = vld [vmem:[#allocation7 + $0x2e4] ss:$16 sps:$4 sm:$0xff]   ;;  %v5064_v46 = vld [vmem:[#allocation7 + $0x328] ss:$16 sps:$4 sm:$0xff]   ;;  %p5766_p11 = scmp.ne.s32.totalorder %s6135_s19, %s5765_s8  ;;  %p6210_p0 = scmp.ne.s32.totalorder %s6205_s9, 0 }
  0x8d   : > { %3429 = vmatprep.subr.bf16.mxu0 %v4965_v36  ;;  %3773 = vmatprep.subr.bf16.mxu1 %v4967_v37  ;;  %v5054_v36 = vld [vmem:[#allocation7 + $0x2ec] ss:$16 sps:$4 sm:$0xff]   ;;  %v5049_v37 = vld [vmem:[#allocation7 + $0x2e0] ss:$16 sps:$4 sm:$0xff]   ;;  %v5070_v50 = vld [vmem:[#allocation7 + $0x348] ss:$16 sps:$4 sm:$0xff]  }
  0x8e   : > { %p5767_p1 = pnand %p5766_p11, %p6210_p0  ;;  %s5844_s11 = smov [#allocation10]  }
  0x8f   : > { %s5769_s12 = sshll.u32 %s5844_s11, 4  ;;  %s5770_s12 = int_to_ptr.vmem [resolvable:$false] %s5769_s12 }
  0x90   : > { %3430 = vmatpush1.bf16.msra.mxu0 %v4969_v38  ;;  %3774 = vmatpush1.bf16.msra.mxu1 %v4970_v39  ;;  %v5052_v38 = vld [vmem:[#allocation7 + $0x2e8] ss:$16 sps:$4 sm:$0xff]   ;;  %v5057_v39 = vld [vmem:[#allocation7 + $0x304] ss:$16 sps:$4 sm:$0xff]   ;;  %p5768_p3 = pneg %p5767_p1  ;;  %s5771_s27 = scalar_lea.vmem %s5770_s12, 2048 }
  0x91   : > { %3431 = vmatprep.subr.bf16.mxu0 %v4971_v40  ;;  %3775 = vmatprep.subr.bf16.mxu1 %v4973_v41  ;;  %v5060_v40 = vld [vmem:[#allocation7 + $0x30c] ss:$16 sps:$4 sm:$0xff]   ;;  %v5055_v41 = vld [vmem:[#allocation7 + $0x300] ss:$16 sps:$4 sm:$0xff]   ;;  %p5772_p7 = scmp.lt.s32.totalorder %s6135_s19, %s5770_s12  ;;  %p5773_p9 = scmp.lt.s32.totalorder %s5771_s27, %s5765_s8 }
  0x93   : > { %p5774_p12 = por %p5773_p9, %p5772_p7 }
  0x94   : > { %3432 = vmatpush1.bf16.msra.mxu0 %v4975_v42  ;;  %3776 = vmatpush1.bf16.msra.mxu1 %v4976_v43  ;;  %v5058_v42 = vld [vmem:[#allocation7 + $0x308] ss:$16 sps:$4 sm:$0xff]   ;;  %v5063_v43 = vld [vmem:[#allocation7 + $0x324] ss:$16 sps:$4 sm:$0xff]  }
  0x95   : > { %3433 = vmatprep.subr.bf16.mxu0 %v4977_v44  ;;  %3777 = vmatprep.subr.bf16.mxu1 %v4979_v45  ;;  %v5066_v44 = vld [vmem:[#allocation7 + $0x32c] ss:$16 sps:$4 sm:$0xff]   ;;  %v5061_v45 = vld [vmem:[#allocation7 + $0x320] ss:$16 sps:$4 sm:$0xff]   ;;  %p5775_p2 = pnand %p5774_p12, %p5768_p3 }
  0x98   : > { %3434 = vmatpush1.bf16.msra.mxu0 %v4981_v48  ;;  %3778 = vmatpush1.bf16.msra.mxu1 %v4982_v49  ;;  %v5072_v48 = vld [vmem:[#allocation7 + $0x34c] ss:$16 sps:$4 sm:$0xff]   ;;  %v5067_v49 = vld [vmem:[#allocation7 + $0x340] ss:$16 sps:$4 sm:$0xff]  }
  0x99   : > { %3435 = vmatprep.subr.bf16.mxu0 %v4983_v51  ;;  %3779 = vmatprep.subr.bf16.mxu1 %v4985_v52  ;;  %v5075_v51 = vld [vmem:[#allocation7 + $0x364] ss:$16 sps:$4 sm:$0xff]   ;;  %v5078_v52 = vld [vmem:[#allocation7 + $0x36c] ss:$16 sps:$4 sm:$0xff]  }
  0x9c   : > { %3436 = vmatpush1.bf16.msra.mxu0 %v4987_v53  ;;  %3780 = vmatpush1.bf16.msra.mxu1 %v4988_v54  ;;  %v5073_v53 = vld [vmem:[#allocation7 + $0x360] ss:$16 sps:$4 sm:$0xff]   ;;  %v5076_v54 = vld [vmem:[#allocation7 + $0x368] ss:$16 sps:$4 sm:$0xff]  }
  0x9d   : > { %3437 = vmatprep.subr.bf16.mxu0 %v4989_v55  ;;  %3781 = vmatprep.subr.bf16.mxu1 %v4991_v56  ;;  %v5081_v55 = vld [vmem:[#allocation7 + $0x384] ss:$16 sps:$4 sm:$0xff]   ;;  %v5084_v56 = vld [vmem:[#allocation7 + $0x38c] ss:$16 sps:$4 sm:$0xff]  }
  0xa0   : > { %3438 = vmatpush1.bf16.msra.mxu0 %v4993_v57  ;;  %3782 = vmatpush1.bf16.msra.mxu1 %v4994_v58  ;;  %v5079_v57 = vld [vmem:[#allocation7 + $0x380] ss:$16 sps:$4 sm:$0xff]   ;;  %v5082_v58 = vld [vmem:[#allocation7 + $0x388] ss:$16 sps:$4 sm:$0xff]  }
  0xa1   : > { %3439 = vmatprep.subr.bf16.mxu0 %v4995_v59  ;;  %3783 = vmatprep.subr.bf16.mxu1 %v4997_v60  ;;  %v5087_v59 = vld [vmem:[#allocation7 + $0x3a4] ss:$16 sps:$4 sm:$0xff]   ;;  %v5090_v60 = vld [vmem:[#allocation7 + $0x3ac] ss:$16 sps:$4 sm:$0xff]  }
  0xa4   : > { %3440 = vmatpush1.bf16.msra.mxu0 %v4999_v61  ;;  %3784 = vmatpush1.bf16.msra.mxu1 %v5000_v62  ;;  %v5085_v61 = vld [vmem:[#allocation7 + $0x3a0] ss:$16 sps:$4 sm:$0xff]   ;;  %v5088_v62 = vld [vmem:[#allocation7 + $0x3a8] ss:$16 sps:$4 sm:$0xff]  }
  0xa5   : > { %3441 = vmatprep.subr.bf16.mxu0 %v5001_v63  ;;  %3785 = vmatprep.subr.bf16.mxu1 %v5003_v0  ;;  %v5093_v63 = vld [vmem:[#allocation7 + $0x3c4] ss:$16 sps:$4 sm:$0xff]   ;;  %v5096_v0 = vld [vmem:[#allocation7 + $0x3cc] ss:$16 sps:$4 sm:$0xff]  }
  0xa8   : > { %3442 = vmatpush1.bf16.msra.mxu0 %v5005_v1  ;;  %3786 = vmatpush1.bf16.msra.mxu1 %v5006_v2  ;;  %v5091_v1 = vld [vmem:[#allocation7 + $0x3c0] ss:$16 sps:$4 sm:$0xff]   ;;  %v5094_v2 = vld [vmem:[#allocation7 + $0x3c8] ss:$16 sps:$4 sm:$0xff]  }
  0xa9   : > { %3454 = vmatprep.subr.bf16.mxu0 %v5009_v3  ;;  %3798 = vmatprep.subr.bf16.mxu1 %v5012_v4  ;;  %v5099_v3 = vld [vmem:[#allocation7 + $0x3e4] ss:$16 sps:$4 sm:$0xff]   ;;  %v5102_v4 = vld [vmem:[#allocation7 + $0x3ec] ss:$16 sps:$4 sm:$0xff]  }
  0xab   : > { %3444 = vmatmul.mubr.bf16.vlgmr.msra.gmra.mrb[0].mxu0 %v4236_v5  ;;  %3788 = vmatmul.mubr.bf16.vlgmr.msra.gmra.mrb[0].mxu1 %v4236_v5  ;;  %v5097_v5 = vld [vmem:[#allocation7 + $0x3e0] ss:$16 sps:$4 sm:$0xff]  }
  0xac   : > { %3455 = vmatpush1.bf16.msra.mxu0 %v5007_v6  ;;  %3799 = vmatpush1.bf16.msra.mxu1 %v5010_v7  ;;  %v5100_v6 = vld [vmem:[#allocation7 + $0x3e8] ss:$16 sps:$4 sm:$0xff]   ;;  %v5105_v7 = vld [vmem:[#allocation7 + $0x404] ss:$16 sps:$4 sm:$0xff]  }
  0xad   : > { %3456 = vmatprep.subr.bf16.mxu0 %v5015_v8  ;;  %3800 = vmatprep.subr.bf16.mxu1 %v5018_v9  ;;  %v5108_v8 = vld [vmem:[#allocation7 + $0x40c] ss:$16 sps:$4 sm:$0xff]   ;;  %v4238_v9 = vcombine.low %v6061_v30, %v6064_v31  ;;  %v5130_v30 = vld [vmem:[#allocation7 + $0x488] ss:$16 sps:$4 sm:$0xff]   ;;  %v5135_v31 = vld [vmem:[#allocation7 + $0x4a4] ss:$16 sps:$4 sm:$0xff]  }
  0xae   : > { %3486 = vmatprep.mubr.bf16.mxu0 %v4239_v34  ;;  %3830 = vmatprep.mubr.bf16.mxu1 %v4239_v34  ;;  %v5136_v34 = vld [vmem:[#allocation7 + $0x4a8] ss:$16 sps:$4 sm:$0xff]  }
  0xb0   : > { %3457 = vmatpush1.bf16.msra.mxu0 %v5013_v10  ;;  %3801 = vmatpush1.bf16.msra.mxu1 %v5016_v11  ;;  %v5103_v10 = vld [vmem:[#allocation7 + $0x400] ss:$16 sps:$4 sm:$0xff]   ;;  %v5106_v11 = vld [vmem:[#allocation7 + $0x408] ss:$16 sps:$4 sm:$0xff]  }
  0xb1   : > { %3458 = vmatprep.subr.bf16.mxu0 %v5021_v12  ;;  %3802 = vmatprep.subr.bf16.mxu1 %v5024_v13  ;;  %v5111_v12 = vld [vmem:[#allocation7 + $0x424] ss:$16 sps:$4 sm:$0xff]   ;;  %v5114_v13 = vld [vmem:[#allocation7 + $0x42c] ss:$16 sps:$4 sm:$0xff]  }
  0xb4   : > { %3459 = vmatpush1.bf16.msra.mxu0 %v5019_v14  ;;  %3803 = vmatpush1.bf16.msra.mxu1 %v5022_v15  ;;  %v6071_v14 = vld [vmem:[%s6048_s6 + $0x10] sm:$0xff] }
  0xb5   : > { %3460 = vmatprep.subr.bf16.mxu0 %v5027_v16  ;;  %3804 = vmatprep.subr.bf16.mxu1 %v5030_v17  ;;  %v6074_v15 = vld [vmem:[%s6048_s6 + $0x50] sm:$0xff] }
  0xb6   : > { %v4241_v16 = vcombine.high %v6071_v14, %v6074_v15  ;;  %v5109_v17 = vld [vmem:[#allocation7 + $0x420] ss:$16 sps:$4 sm:$0xff]  }
  0xb8   : > { %3461 = vmatpush1.bf16.msra.mxu0 %v5025_v18  ;;  %3805 = vmatpush1.bf16.msra.mxu1 %v5028_v19  ;;  %v5112_v18 = vld [vmem:[#allocation7 + $0x428] ss:$16 sps:$4 sm:$0xff]   ;;  %v5117_v19 = vld [vmem:[#allocation7 + $0x444] ss:$16 sps:$4 sm:$0xff]  }
  0xb9   : > { %3462 = vmatprep.subr.bf16.mxu0 %v5033_v20  ;;  %3806 = vmatprep.subr.bf16.mxu1 %v5036_v21  ;;  %v5120_v20 = vld [vmem:[#allocation7 + $0x44c] ss:$16 sps:$4 sm:$0xff]   ;;  %v5115_v21 = vld [vmem:[#allocation7 + $0x440] ss:$16 sps:$4 sm:$0xff]  }
  0xbc   : > { %3463 = vmatpush1.bf16.msra.mxu0 %v5031_v22  ;;  %3807 = vmatpush1.bf16.msra.mxu1 %v5034_v23  ;;  %v5118_v22 = vld [vmem:[#allocation7 + $0x448] ss:$16 sps:$4 sm:$0xff]   ;;  %v5123_v23 = vld [vmem:[#allocation7 + $0x464] ss:$16 sps:$4 sm:$0xff]  }
  0xbd   : > { %3464 = vmatprep.subr.bf16.mxu0 %v5039_v24  ;;  %3808 = vmatprep.subr.bf16.mxu1 %v5042_v25  ;;  %v5126_v24 = vld [vmem:[#allocation7 + $0x46c] ss:$16 sps:$4 sm:$0xff]   ;;  %v5121_v25 = vld [vmem:[#allocation7 + $0x460] ss:$16 sps:$4 sm:$0xff]  }
  0xc0   : > { %3465 = vmatpush1.bf16.msra.mxu0 %v5037_v26  ;;  %3809 = vmatpush1.bf16.msra.mxu1 %v5040_v27  ;;  %v5124_v26 = vld [vmem:[#allocation7 + $0x468] ss:$16 sps:$4 sm:$0xff]   ;;  %v5129_v27 = vld [vmem:[#allocation7 + $0x484] ss:$16 sps:$4 sm:$0xff]  }
  0xc1   : > { %3466 = vmatprep.subr.bf16.mxu0 %v5045_v28  ;;  %3810 = vmatprep.subr.bf16.mxu1 %v5048_v29  ;;  %v5132_v28 = vld [vmem:[#allocation7 + $0x48c] ss:$16 sps:$4 sm:$0xff]   ;;  %v5127_v29 = vld [vmem:[#allocation7 + $0x480] ss:$16 sps:$4 sm:$0xff]  }
  0xc4   : > { %3467 = vmatpush1.bf16.msra.mxu0 %v5043_v32  ;;  %3811 = vmatpush1.bf16.msra.mxu1 %v5046_v33  ;;  %v5138_v32 = vld [vmem:[#allocation7 + $0x4ac] ss:$16 sps:$4 sm:$0xff]   ;;  %v5133_v33 = vld [vmem:[#allocation7 + $0x4a0] ss:$16 sps:$4 sm:$0xff]  }
  0xc5   : > { %3468 = vmatprep.subr.bf16.mxu0 %v5051_v35  ;;  %3812 = vmatprep.subr.bf16.mxu1 %v5054_v36  ;;  %v5141_v35 = vld [vmem:[#allocation7 + $0x4c4] ss:$16 sps:$4 sm:$0xff]   ;;  %v5144_v36 = vld [vmem:[#allocation7 + $0x4cc] ss:$16 sps:$4 sm:$0xff]  }
  0xc8   : > { %3469 = vmatpush1.bf16.msra.mxu0 %v5049_v37  ;;  %3813 = vmatpush1.bf16.msra.mxu1 %v5052_v38  ;;  %v5139_v37 = vld [vmem:[#allocation7 + $0x4c0] ss:$16 sps:$4 sm:$0xff]   ;;  %v5142_v38 = vld [vmem:[#allocation7 + $0x4c8] ss:$16 sps:$4 sm:$0xff]  }
  0xc9   : > { %3470 = vmatprep.subr.bf16.mxu0 %v5057_v39  ;;  %3814 = vmatprep.subr.bf16.mxu1 %v5060_v40  ;;  %v5147_v39 = vld [vmem:[#allocation7 + $0x4e4] ss:$16 sps:$4 sm:$0xff]   ;;  %v5150_v40 = vld [vmem:[#allocation7 + $0x4ec] ss:$16 sps:$4 sm:$0xff]  }
  0xcc   : > { %3471 = vmatpush1.bf16.msra.mxu0 %v5055_v41  ;;  %3815 = vmatpush1.bf16.msra.mxu1 %v5058_v42  ;;  %v5145_v41 = vld [vmem:[#allocation7 + $0x4e0] ss:$16 sps:$4 sm:$0xff]   ;;  %v5148_v42 = vld [vmem:[#allocation7 + $0x4e8] ss:$16 sps:$4 sm:$0xff]  }
  0xcd   : > { %3472 = vmatprep.subr.bf16.mxu0 %v5063_v43  ;;  %3816 = vmatprep.subr.bf16.mxu1 %v5066_v44  ;;  %v5153_v43 = vld [vmem:[#allocation7 + $0x504] ss:$16 sps:$4 sm:$0xff]   ;;  %v5156_v44 = vld [vmem:[#allocation7 + $0x50c] ss:$16 sps:$4 sm:$0xff]  }
  0xd0   : > { %3473 = vmatpush1.bf16.msra.mxu0 %v5061_v45  ;;  %3817 = vmatpush1.bf16.msra.mxu1 %v5064_v46  ;;  %v5151_v45 = vld [vmem:[#allocation7 + $0x500] ss:$16 sps:$4 sm:$0xff]   ;;  %v5154_v46 = vld [vmem:[#allocation7 + $0x508] ss:$16 sps:$4 sm:$0xff]  }
  0xd1   : > { %3474 = vmatprep.subr.bf16.mxu0 %v5069_v47  ;;  %3818 = vmatprep.subr.bf16.mxu1 %v5072_v48  ;;  %v5159_v47 = vld [vmem:[#allocation7 + $0x524] ss:$16 sps:$4 sm:$0xff]   ;;  %v5162_v48 = vld [vmem:[#allocation7 + $0x52c] ss:$16 sps:$4 sm:$0xff]  }
  0xd4   : > { %3475 = vmatpush1.bf16.msra.mxu0 %v5067_v49  ;;  %3819 = vmatpush1.bf16.msra.mxu1 %v5070_v50  ;;  %v5157_v49 = vld [vmem:[#allocation7 + $0x520] ss:$16 sps:$4 sm:$0xff]   ;;  %v5160_v50 = vld [vmem:[#allocation7 + $0x528] ss:$16 sps:$4 sm:$0xff]  }
  0xd5   : > { %3476 = vmatprep.subr.bf16.mxu0 %v5075_v51  ;;  %3820 = vmatprep.subr.bf16.mxu1 %v5078_v52  ;;  %v5165_v51 = vld [vmem:[#allocation7 + $0x544] ss:$16 sps:$4 sm:$0xff]   ;;  %v5168_v52 = vld [vmem:[#allocation7 + $0x54c] ss:$16 sps:$4 sm:$0xff]  }
  0xd8   : > { %3477 = vmatpush1.bf16.msra.mxu0 %v5073_v53  ;;  %3821 = vmatpush1.bf16.msra.mxu1 %v5076_v54  ;;  %v5163_v53 = vld [vmem:[#allocation7 + $0x540] ss:$16 sps:$4 sm:$0xff]   ;;  %v5166_v54 = vld [vmem:[#allocation7 + $0x548] ss:$16 sps:$4 sm:$0xff]  }
  0xd9   : > { %3478 = vmatprep.subr.bf16.mxu0 %v5081_v55  ;;  %3822 = vmatprep.subr.bf16.mxu1 %v5084_v56  ;;  %v5171_v55 = vld [vmem:[#allocation7 + $0x564] ss:$16 sps:$4 sm:$0xff]   ;;  %v5174_v56 = vld [vmem:[#allocation7 + $0x56c] ss:$16 sps:$4 sm:$0xff]  }
  0xdc   : > { %3479 = vmatpush1.bf16.msra.mxu0 %v5079_v57  ;;  %3823 = vmatpush1.bf16.msra.mxu1 %v5082_v58  ;;  %v5169_v57 = vld [vmem:[#allocation7 + $0x560] ss:$16 sps:$4 sm:$0xff]   ;;  %v5172_v58 = vld [vmem:[#allocation7 + $0x568] ss:$16 sps:$4 sm:$0xff]  }
  0xdd   : > { %3480 = vmatprep.subr.bf16.mxu0 %v5087_v59  ;;  %3824 = vmatprep.subr.bf16.mxu1 %v5090_v60  ;;  %v5177_v59 = vld [vmem:[#allocation7 + $0x584] ss:$16 sps:$4 sm:$0xff]   ;;  %v5180_v60 = vld [vmem:[#allocation7 + $0x58c] ss:$16 sps:$4 sm:$0xff]  }
  0xe0   : > { %3481 = vmatpush1.bf16.msra.mxu0 %v5085_v61  ;;  %3825 = vmatpush1.bf16.msra.mxu1 %v5088_v62  ;;  %v5175_v61 = vld [vmem:[#allocation7 + $0x580] ss:$16 sps:$4 sm:$0xff]   ;;  %v5178_v62 = vld [vmem:[#allocation7 + $0x588] ss:$16 sps:$4 sm:$0xff]  }
  0xe1   : > { %3482 = vmatprep.subr.bf16.mxu0 %v5093_v63  ;;  %3826 = vmatprep.subr.bf16.mxu1 %v5096_v0  ;;  %v5183_v63 = vld [vmem:[#allocation7 + $0x5a4] ss:$16 sps:$4 sm:$0xff]   ;;  %v5186_v0 = vld [vmem:[#allocation7 + $0x5ac] ss:$16 sps:$4 sm:$0xff]  }
  0xe4   : > { %3483 = vmatpush1.bf16.msra.mxu0 %v5091_v1  ;;  %3827 = vmatpush1.bf16.msra.mxu1 %v5094_v2  ;;  %v5181_v1 = vld [vmem:[#allocation7 + $0x5a0] ss:$16 sps:$4 sm:$0xff]   ;;  %v5184_v2 = vld [vmem:[#allocation7 + $0x5a8] ss:$16 sps:$4 sm:$0xff]  }
  0xe5   : > { %3484 = vmatprep.subr.bf16.mxu0 %v5099_v3  ;;  %3828 = vmatprep.subr.bf16.mxu1 %v5102_v4  ;;  %v5189_v3 = vld [vmem:[#allocation7 + $0x5c4] ss:$16 sps:$4 sm:$0xff]   ;;  %v5192_v4 = vld [vmem:[#allocation7 + $0x5cc] ss:$16 sps:$4 sm:$0xff]  }
  0xe8   : > { %3485 = vmatpush1.bf16.msra.mxu0 %v5097_v5  ;;  %3829 = vmatpush1.bf16.msra.mxu1 %v5100_v6  ;;  %v5187_v5 = vld [vmem:[#allocation7 + $0x5c0] ss:$16 sps:$4 sm:$0xff]   ;;  %v5190_v6 = vld [vmem:[#allocation7 + $0x5c8] ss:$16 sps:$4 sm:$0xff]  }
  0xe9   : > { %3497 = vmatprep.subr.bf16.mxu0 %v5105_v7  ;;  %3841 = vmatprep.subr.bf16.mxu1 %v5108_v8  ;;  %v5195_v7 = vld [vmem:[#allocation7 + $0x5e4] ss:$16 sps:$4 sm:$0xff]   ;;  %v5198_v8 = vld [vmem:[#allocation7 + $0x5ec] ss:$16 sps:$4 sm:$0xff]  }
  0xeb   : > { %3487 = vmatmul.mubr.bf16.vlgmr.msra.gmra.mrb[0].mxu0 %v4238_v9  ;;  %3831 = vmatmul.mubr.bf16.vlgmr.msra.gmra.mrb[0].mxu1 %v4238_v9  ;;  %v5193_v9 = vld [vmem:[#allocation7 + $0x5e0] ss:$16 sps:$4 sm:$0xff]  }
  0xec   : > { %3498 = vmatpush1.bf16.msra.mxu0 %v5103_v10  ;;  %3842 = vmatpush1.bf16.msra.mxu1 %v5106_v11  ;;  %v5196_v10 = vld [vmem:[#allocation7 + $0x5e8] ss:$16 sps:$4 sm:$0xff]   ;;  %v5201_v11 = vld [vmem:[#allocation7 + $0x604] ss:$16 sps:$4 sm:$0xff]  }
  0xed   : > { %3499 = vmatprep.subr.bf16.mxu0 %v5111_v12  ;;  %3843 = vmatprep.subr.bf16.mxu1 %v5114_v13  ;;  %v5204_v12 = vld [vmem:[#allocation7 + $0x60c] ss:$16 sps:$4 sm:$0xff]   ;;  %v5199_v13 = vld [vmem:[#allocation7 + $0x600] ss:$16 sps:$4 sm:$0xff]  }
  0xee   : > { %3529 = vmatprep.mubr.bf16.mxu0 %v4241_v16  ;;  %3873 = vmatprep.mubr.bf16.mxu1 %v4241_v16  ;;  %v5202_v16 = vld [vmem:[#allocation7 + $0x608] ss:$16 sps:$4 sm:$0xff]  }
  0xf0   : > { %3500 = vmatpush1.bf16.msra.mxu0 %v5109_v17  ;;  %3844 = vmatpush1.bf16.msra.mxu1 %v5112_v18  ;;  %v4240_v17 = vcombine.low %v6071_v14, %v6074_v15  ;;  %v6081_v18 = vld [vmem:[%s6048_s6 + $0x18] sm:$0xff]  ;;  %v5213_v14 = vld [vmem:[#allocation7 + $0x644] ss:$16 sps:$4 sm:$0xff]  }
  0xf1   : > { %3501 = vmatprep.subr.bf16.mxu0 %v5117_v19  ;;  %3845 = vmatprep.subr.bf16.mxu1 %v5120_v20  ;;  %v6084_v19 = vld [vmem:[%s6048_s6 + $0x58] sm:$0xff]  ;;  %v5207_v20 = vld [vmem:[#allocation7 + $0x624] ss:$16 sps:$4 sm:$0xff]  }
  0xf2   : > { %v5216_v15 = vld [vmem:[#allocation7 + $0x64c] ss:$16 sps:$4 sm:$0xff]  }
  0xf4   : > { %3502 = vmatpush1.bf16.msra.mxu0 %v5115_v21  ;;  %3846 = vmatpush1.bf16.msra.mxu1 %v5118_v22  ;;  %v5210_v21 = vld [vmem:[#allocation7 + $0x62c] ss:$16 sps:$4 sm:$0xff]   ;;  %v4243_v22 = vcombine.high %v6081_v18, %v6084_v19 }
  0xf5   : > { %3503 = vmatprep.subr.bf16.mxu0 %v5123_v23  ;;  %3847 = vmatprep.subr.bf16.mxu1 %v5126_v24  ;;  %v5205_v23 = vld [vmem:[#allocation7 + $0x620] ss:$16 sps:$4 sm:$0xff]   ;;  %v5208_v24 = vld [vmem:[#allocation7 + $0x628] ss:$16 sps:$4 sm:$0xff]  }
  0xf8   : > { %3504 = vmatpush1.bf16.msra.mxu0 %v5121_v25  ;;  %3848 = vmatpush1.bf16.msra.mxu1 %v5124_v26  ;;  %v5211_v25 = vld [vmem:[#allocation7 + $0x640] ss:$16 sps:$4 sm:$0xff]   ;;  %v5214_v26 = vld [vmem:[#allocation7 + $0x648] ss:$16 sps:$4 sm:$0xff]  }
  0xf9   : > { %3505 = vmatprep.subr.bf16.mxu0 %v5129_v27  ;;  %3849 = vmatprep.subr.bf16.mxu1 %v5132_v28  ;;  %v5219_v27 = vld [vmem:[#allocation7 + $0x664] ss:$16 sps:$4 sm:$0xff]   ;;  %v5222_v28 = vld [vmem:[#allocation7 + $0x66c] ss:$16 sps:$4 sm:$0xff]  }
  0xfc   : > { %3506 = vmatpush1.bf16.msra.mxu0 %v5127_v29  ;;  %3850 = vmatpush1.bf16.msra.mxu1 %v5130_v30  ;;  %v5217_v29 = vld [vmem:[#allocation7 + $0x660] ss:$16 sps:$4 sm:$0xff]   ;;  %v5220_v30 = vld [vmem:[#allocation7 + $0x668] ss:$16 sps:$4 sm:$0xff]  }
  0xfd   : > { %3507 = vmatprep.subr.bf16.mxu0 %v5135_v31  ;;  %3851 = vmatprep.subr.bf16.mxu1 %v5138_v32  ;;  %v5225_v31 = vld [vmem:[#allocation7 + $0x684] ss:$16 sps:$4 sm:$0xff]   ;;  %v5228_v32 = vld [vmem:[#allocation7 + $0x68c] ss:$16 sps:$4 sm:$0xff]  }
 0x100   : > { %3508 = vmatpush1.bf16.msra.mxu0 %v5133_v33  ;;  %3852 = vmatpush1.bf16.msra.mxu1 %v5136_v34  ;;  %v5223_v33 = vld [vmem:[#allocation7 + $0x680] ss:$16 sps:$4 sm:$0xff]   ;;  %v5226_v34 = vld [vmem:[#allocation7 + $0x688] ss:$16 sps:$4 sm:$0xff]  }
 0x101   : > { %3509 = vmatprep.subr.bf16.mxu0 %v5141_v35  ;;  %3853 = vmatprep.subr.bf16.mxu1 %v5144_v36  ;;  %v5231_v35 = vld [vmem:[#allocation7 + $0x6a4] ss:$16 sps:$4 sm:$0xff]   ;;  %v5234_v36 = vld [vmem:[#allocation7 + $0x6ac] ss:$16 sps:$4 sm:$0xff]  }
 0x104   : > { %3510 = vmatpush1.bf16.msra.mxu0 %v5139_v37  ;;  %3854 = vmatpush1.bf16.msra.mxu1 %v5142_v38  ;;  %v5229_v37 = vld [vmem:[#allocation7 + $0x6a0] ss:$16 sps:$4 sm:$0xff]   ;;  %v5232_v38 = vld [vmem:[#allocation7 + $0x6a8] ss:$16 sps:$4 sm:$0xff]  }
 0x105   : > { %3511 = vmatprep.subr.bf16.mxu0 %v5147_v39  ;;  %3855 = vmatprep.subr.bf16.mxu1 %v5150_v40  ;;  %v5237_v39 = vld [vmem:[#allocation7 + $0x6c4] ss:$16 sps:$4 sm:$0xff]   ;;  %v5240_v40 = vld [vmem:[#allocation7 + $0x6cc] ss:$16 sps:$4 sm:$0xff]  }
 0x108   : > { %3512 = vmatpush1.bf16.msra.mxu0 %v5145_v41  ;;  %3856 = vmatpush1.bf16.msra.mxu1 %v5148_v42  ;;  %v5235_v41 = vld [vmem:[#allocation7 + $0x6c0] ss:$16 sps:$4 sm:$0xff]   ;;  %v5238_v42 = vld [vmem:[#allocation7 + $0x6c8] ss:$16 sps:$4 sm:$0xff]  }
 0x109   : > { %3513 = vmatprep.subr.bf16.mxu0 %v5153_v43  ;;  %3857 = vmatprep.subr.bf16.mxu1 %v5156_v44  ;;  %v5243_v43 = vld [vmem:[#allocation7 + $0x6e4] ss:$16 sps:$4 sm:$0xff]   ;;  %v5246_v44 = vld [vmem:[#allocation7 + $0x6ec] ss:$16 sps:$4 sm:$0xff]  }
 0x10c   : > { %3514 = vmatpush1.bf16.msra.mxu0 %v5151_v45  ;;  %3858 = vmatpush1.bf16.msra.mxu1 %v5154_v46  ;;  %v5241_v45 = vld [vmem:[#allocation7 + $0x6e0] ss:$16 sps:$4 sm:$0xff]   ;;  %v5244_v46 = vld [vmem:[#allocation7 + $0x6e8] ss:$16 sps:$4 sm:$0xff]  }
 0x10d   : > { %3515 = vmatprep.subr.bf16.mxu0 %v5159_v47  ;;  %3859 = vmatprep.subr.bf16.mxu1 %v5162_v48  ;;  %v5249_v47 = vld [vmem:[#allocation7 + $0x704] ss:$16 sps:$4 sm:$0xff]   ;;  %v5252_v48 = vld [vmem:[#allocation7 + $0x70c] ss:$16 sps:$4 sm:$0xff]  }
 0x110   : > { %3516 = vmatpush1.bf16.msra.mxu0 %v5157_v49  ;;  %3860 = vmatpush1.bf16.msra.mxu1 %v5160_v50  ;;  %v5247_v49 = vld [vmem:[#allocation7 + $0x700] ss:$16 sps:$4 sm:$0xff]   ;;  %v5250_v50 = vld [vmem:[#allocation7 + $0x708] ss:$16 sps:$4 sm:$0xff]  }
 0x111   : > { %3517 = vmatprep.subr.bf16.mxu0 %v5165_v51  ;;  %3861 = vmatprep.subr.bf16.mxu1 %v5168_v52  ;;  %v5255_v51 = vld [vmem:[#allocation7 + $0x724] ss:$16 sps:$4 sm:$0xff]   ;;  %v5258_v52 = vld [vmem:[#allocation7 + $0x72c] ss:$16 sps:$4 sm:$0xff]  }
 0x114   : > { %3518 = vmatpush1.bf16.msra.mxu0 %v5163_v53  ;;  %3862 = vmatpush1.bf16.msra.mxu1 %v5166_v54  ;;  %v5253_v53 = vld [vmem:[#allocation7 + $0x720] ss:$16 sps:$4 sm:$0xff]   ;;  %v5256_v54 = vld [vmem:[#allocation7 + $0x728] ss:$16 sps:$4 sm:$0xff]  }
 0x115   : > { %3519 = vmatprep.subr.bf16.mxu0 %v5171_v55  ;;  %3863 = vmatprep.subr.bf16.mxu1 %v5174_v56  ;;  %v5261_v55 = vld [vmem:[#allocation7 + $0x744] ss:$16 sps:$4 sm:$0xff]   ;;  %v5264_v56 = vld [vmem:[#allocation7 + $0x74c] ss:$16 sps:$4 sm:$0xff]  }
 0x118   : > { %3520 = vmatpush1.bf16.msra.mxu0 %v5169_v57  ;;  %3864 = vmatpush1.bf16.msra.mxu1 %v5172_v58  ;;  %v5259_v57 = vld [vmem:[#allocation7 + $0x740] ss:$16 sps:$4 sm:$0xff]   ;;  %v5262_v58 = vld [vmem:[#allocation7 + $0x748] ss:$16 sps:$4 sm:$0xff]  }
 0x119   : > { %3521 = vmatprep.subr.bf16.mxu0 %v5177_v59  ;;  %3865 = vmatprep.subr.bf16.mxu1 %v5180_v60  ;;  %v5267_v59 = vld [vmem:[#allocation7 + $0x764] ss:$16 sps:$4 sm:$0xff]   ;;  %v5270_v60 = vld [vmem:[#allocation7 + $0x76c] ss:$16 sps:$4 sm:$0xff]  }
 0x11c   : > { %3522 = vmatpush1.bf16.msra.mxu0 %v5175_v61  ;;  %3866 = vmatpush1.bf16.msra.mxu1 %v5178_v62  ;;  %v5265_v61 = vld [vmem:[#allocation7 + $0x760] ss:$16 sps:$4 sm:$0xff]   ;;  %v5268_v62 = vld [vmem:[#allocation7 + $0x768] ss:$16 sps:$4 sm:$0xff]  }
 0x11d   : > { %3523 = vmatprep.subr.bf16.mxu0 %v5183_v63  ;;  %3867 = vmatprep.subr.bf16.mxu1 %v5186_v0  ;;  %v5273_v63 = vld [vmem:[#allocation7 + $0x784] ss:$16 sps:$4 sm:$0xff]   ;;  %v5276_v0 = vld [vmem:[#allocation7 + $0x78c] ss:$16 sps:$4 sm:$0xff]  }
 0x120   : > { %3524 = vmatpush1.bf16.msra.mxu0 %v5181_v1  ;;  %3868 = vmatpush1.bf16.msra.mxu1 %v5184_v2  ;;  %v5271_v1 = vld [vmem:[#allocation7 + $0x780] ss:$16 sps:$4 sm:$0xff]   ;;  %v5274_v2 = vld [vmem:[#allocation7 + $0x788] ss:$16 sps:$4 sm:$0xff]  }
 0x121   : > { %3525 = vmatprep.subr.bf16.mxu0 %v5189_v3  ;;  %3869 = vmatprep.subr.bf16.mxu1 %v5192_v4  ;;  %v5279_v3 = vld [vmem:[#allocation7 + $0x7a4] ss:$16 sps:$4 sm:$0xff]   ;;  %v5282_v4 = vld [vmem:[#allocation7 + $0x7ac] ss:$16 sps:$4 sm:$0xff]  }
 0x124   : > { %3526 = vmatpush1.bf16.msra.mxu0 %v5187_v5  ;;  %3870 = vmatpush1.bf16.msra.mxu1 %v5190_v6  ;;  %v5277_v5 = vld [vmem:[#allocation7 + $0x7a0] ss:$16 sps:$4 sm:$0xff]   ;;  %v5280_v6 = vld [vmem:[#allocation7 + $0x7a8] ss:$16 sps:$4 sm:$0xff]  }
 0x125   : > { %3527 = vmatprep.subr.bf16.mxu0 %v5195_v7  ;;  %3871 = vmatprep.subr.bf16.mxu1 %v5198_v8  ;;  %v5285_v7 = vld [vmem:[#allocation7 + $0x7c4] ss:$16 sps:$4 sm:$0xff]   ;;  %v5288_v8 = vld [vmem:[#allocation7 + $0x7cc] ss:$16 sps:$4 sm:$0xff]  }
 0x128   : > { %3528 = vmatpush1.bf16.msra.mxu0 %v5193_v9  ;;  %3872 = vmatpush1.bf16.msra.mxu1 %v5196_v10  ;;  %v5283_v9 = vld [vmem:[#allocation7 + $0x7c0] ss:$16 sps:$4 sm:$0xff]   ;;  %v5286_v10 = vld [vmem:[#allocation7 + $0x7c8] ss:$16 sps:$4 sm:$0xff]  }
 0x129   : > { %3540 = vmatprep.subr.bf16.mxu0 %v5201_v11  ;;  %3884 = vmatprep.subr.bf16.mxu1 %v5204_v12  ;;  %v5291_v11 = vld [vmem:[#allocation7 + $0x7e4] ss:$16 sps:$4 sm:$0xff]   ;;  %v5294_v12 = vld [vmem:[#allocation7 + $0x7ec] ss:$16 sps:$4 sm:$0xff]  }
 0x12b   : > { %3530 = vmatmul.mubr.bf16.vlgmr.msra.gmra.mrb[0].mxu0 %v4240_v17  ;;  %3874 = vmatmul.mubr.bf16.vlgmr.msra.gmra.mrb[0].mxu1 %v4240_v17  ;;  %v5297_v17 = vld [vmem:[#allocation7 + $0x804] ss:$16 sps:$4 sm:$0xff]  }
 0x12c   : > { %3541 = vmatpush1.bf16.msra.mxu0 %v5199_v13  ;;  %3885 = vmatpush1.bf16.msra.mxu1 %v5202_v16  ;;  %v5289_v13 = vld [vmem:[#allocation7 + $0x7e0] ss:$16 sps:$4 sm:$0xff]   ;;  %v5292_v16 = vld [vmem:[#allocation7 + $0x7e8] ss:$16 sps:$4 sm:$0xff]  }
 0x12d   : > { %3542 = vmatprep.subr.bf16.mxu0 %v5207_v20  ;;  %3886 = vmatprep.subr.bf16.mxu1 %v5210_v21  ;;  %v5300_v20 = vld [vmem:[#allocation7 + $0x80c] ss:$16 sps:$4 sm:$0xff]   ;;  %v6089_v21 = vld [vmem:[%s6048_s6 + $0x20] sm:$0xff] }
 0x12e   : > { %3572 = vmatprep.mubr.bf16.mxu0 %v4243_v22  ;;  %3916 = vmatprep.mubr.bf16.mxu1 %v4243_v22  ;;  %v4242_v22 = vcombine.low %v6081_v18, %v6084_v19  ;;  %v5309_v18 = vld [vmem:[#allocation7 + $0x844] ss:$16 sps:$4 sm:$0xff]   ;;  %v5312_v19 = vld [vmem:[#allocation7 + $0x84c] ss:$16 sps:$4 sm:$0xff]  }
 0x130   : > { %3543 = vmatpush1.bf16.msra.mxu0 %v5205_v23  ;;  %3887 = vmatpush1.bf16.msra.mxu1 %v5208_v24  ;;  %v6094_v23 = vld [vmem:[%s6048_s6 + $0x60] sm:$0xff] }
 0x131   : > { %3544 = vmatprep.subr.bf16.mxu0 %v5213_v14  ;;  %3888 = vmatprep.subr.bf16.mxu1 %v5216_v15  ;;  %v5295_v24 = vld [vmem:[#allocation7 + $0x800] ss:$16 sps:$4 sm:$0xff]   ;;  %v5298_v14 = vld [vmem:[#allocation7 + $0x808] ss:$16 sps:$4 sm:$0xff]   ;;  %v5303_v15 = vld [vmem:[#allocation7 + $0x824] ss:$16 sps:$4 sm:$0xff]  }
 0x134   : > { %3545 = vmatpush1.bf16.msra.mxu0 %v5211_v25  ;;  %3889 = vmatpush1.bf16.msra.mxu1 %v5214_v26  ;;  %v5306_v25 = vld [vmem:[#allocation7 + $0x82c] ss:$16 sps:$4 sm:$0xff]   ;;  %v4245_v26 = vcombine.high %v6089_v21, %v6094_v23 }
 0x135   : > { %3546 = vmatprep.subr.bf16.mxu0 %v5219_v27  ;;  %3890 = vmatprep.subr.bf16.mxu1 %v5222_v28  ;;  %v5301_v27 = vld [vmem:[#allocation7 + $0x820] ss:$16 sps:$4 sm:$0xff]   ;;  %v5304_v28 = vld [vmem:[#allocation7 + $0x828] ss:$16 sps:$4 sm:$0xff]  }
 0x138   : > { %3547 = vmatpush1.bf16.msra.mxu0 %v5217_v29  ;;  %3891 = vmatpush1.bf16.msra.mxu1 %v5220_v30  ;;  %v5307_v29 = vld [vmem:[#allocation7 + $0x840] ss:$16 sps:$4 sm:$0xff]   ;;  %v5310_v30 = vld [vmem:[#allocation7 + $0x848] ss:$16 sps:$4 sm:$0xff]  }
 0x139   : > { %3548 = vmatprep.subr.bf16.mxu0 %v5225_v31  ;;  %3892 = vmatprep.subr.bf16.mxu1 %v5228_v32  ;;  %v5315_v31 = vld [vmem:[#allocation7 + $0x864] ss:$16 sps:$4 sm:$0xff]   ;;  %v5318_v32 = vld [vmem:[#allocation7 + $0x86c] ss:$16 sps:$4 sm:$0xff]  }
 0x13c   : > { %3549 = vmatpush1.bf16.msra.mxu0 %v5223_v33  ;;  %3893 = vmatpush1.bf16.msra.mxu1 %v5226_v34  ;;  %v5313_v33 = vld [vmem:[#allocation7 + $0x860] ss:$16 sps:$4 sm:$0xff]   ;;  %v5316_v34 = vld [vmem:[#allocation7 + $0x868] ss:$16 sps:$4 sm:$0xff]  }
 0x13d   : > { %3550 = vmatprep.subr.bf16.mxu0 %v5231_v35  ;;  %3894 = vmatprep.subr.bf16.mxu1 %v5234_v36  ;;  %v5321_v35 = vld [vmem:[#allocation7 + $0x884] ss:$16 sps:$4 sm:$0xff]   ;;  %v5324_v36 = vld [vmem:[#allocation7 + $0x88c] ss:$16 sps:$4 sm:$0xff]  }
 0x140   : > { %3551 = vmatpush1.bf16.msra.mxu0 %v5229_v37  ;;  %3895 = vmatpush1.bf16.msra.mxu1 %v5232_v38  ;;  %v5319_v37 = vld [vmem:[#allocation7 + $0x880] ss:$16 sps:$4 sm:$0xff]   ;;  %v5322_v38 = vld [vmem:[#allocation7 + $0x888] ss:$16 sps:$4 sm:$0xff]  }
 0x141   : > { %3552 = vmatprep.subr.bf16.mxu0 %v5237_v39  ;;  %3896 = vmatprep.subr.bf16.mxu1 %v5240_v40  ;;  %v5327_v39 = vld [vmem:[#allocation7 + $0x8a4] ss:$16 sps:$4 sm:$0xff]   ;;  %v5330_v40 = vld [vmem:[#allocation7 + $0x8ac] ss:$16 sps:$4 sm:$0xff]  }
 0x144   : > { %3553 = vmatpush1.bf16.msra.mxu0 %v5235_v41  ;;  %3897 = vmatpush1.bf16.msra.mxu1 %v5238_v42  ;;  %v5325_v41 = vld [vmem:[#allocation7 + $0x8a0] ss:$16 sps:$4 sm:$0xff]   ;;  %v5328_v42 = vld [vmem:[#allocation7 + $0x8a8] ss:$16 sps:$4 sm:$0xff]  }
 0x145   : > { %3554 = vmatprep.subr.bf16.mxu0 %v5243_v43  ;;  %3898 = vmatprep.subr.bf16.mxu1 %v5246_v44  ;;  %v5333_v43 = vld [vmem:[#allocation7 + $0x8c4] ss:$16 sps:$4 sm:$0xff]   ;;  %v5336_v44 = vld [vmem:[#allocation7 + $0x8cc] ss:$16 sps:$4 sm:$0xff]  }
 0x148   : > { %3555 = vmatpush1.bf16.msra.mxu0 %v5241_v45  ;;  %3899 = vmatpush1.bf16.msra.mxu1 %v5244_v46  ;;  %v5331_v45 = vld [vmem:[#allocation7 + $0x8c0] ss:$16 sps:$4 sm:$0xff]   ;;  %v5334_v46 = vld [vmem:[#allocation7 + $0x8c8] ss:$16 sps:$4 sm:$0xff]  }
 0x149   : > { %3556 = vmatprep.subr.bf16.mxu0 %v5249_v47  ;;  %3900 = vmatprep.subr.bf16.mxu1 %v5252_v48  ;;  %v5339_v47 = vld [vmem:[#allocation7 + $0x8e4] ss:$16 sps:$4 sm:$0xff]   ;;  %v5342_v48 = vld [vmem:[#allocation7 + $0x8ec] ss:$16 sps:$4 sm:$0xff]  }
 0x14c   : > { %3557 = vmatpush1.bf16.msra.mxu0 %v5247_v49  ;;  %3901 = vmatpush1.bf16.msra.mxu1 %v5250_v50  ;;  %v5337_v49 = vld [vmem:[#allocation7 + $0x8e0] ss:$16 sps:$4 sm:$0xff]   ;;  %v5340_v50 = vld [vmem:[#allocation7 + $0x8e8] ss:$16 sps:$4 sm:$0xff]  }
 0x14d   : > { %3558 = vmatprep.subr.bf16.mxu0 %v5255_v51  ;;  %3902 = vmatprep.subr.bf16.mxu1 %v5258_v52  ;;  %v5345_v51 = vld [vmem:[#allocation7 + $0x904] ss:$16 sps:$4 sm:$0xff]   ;;  %v5348_v52 = vld [vmem:[#allocation7 + $0x90c] ss:$16 sps:$4 sm:$0xff]  }
 0x150   : > { %3559 = vmatpush1.bf16.msra.mxu0 %v5253_v53  ;;  %3903 = vmatpush1.bf16.msra.mxu1 %v5256_v54  ;;  %v5343_v53 = vld [vmem:[#allocation7 + $0x900] ss:$16 sps:$4 sm:$0xff]   ;;  %v5346_v54 = vld [vmem:[#allocation7 + $0x908] ss:$16 sps:$4 sm:$0xff]  }
 0x151   : > { %3560 = vmatprep.subr.bf16.mxu0 %v5261_v55  ;;  %3904 = vmatprep.subr.bf16.mxu1 %v5264_v56  ;;  %v5351_v55 = vld [vmem:[#allocation7 + $0x924] ss:$16 sps:$4 sm:$0xff]   ;;  %v5354_v56 = vld [vmem:[#allocation7 + $0x92c] ss:$16 sps:$4 sm:$0xff]  }
 0x154   : > { %3561 = vmatpush1.bf16.msra.mxu0 %v5259_v57  ;;  %3905 = vmatpush1.bf16.msra.mxu1 %v5262_v58  ;;  %v5349_v57 = vld [vmem:[#allocation7 + $0x920] ss:$16 sps:$4 sm:$0xff]   ;;  %v5352_v58 = vld [vmem:[#allocation7 + $0x928] ss:$16 sps:$4 sm:$0xff]  }
 0x155   : > { %3562 = vmatprep.subr.bf16.mxu0 %v5267_v59  ;;  %3906 = vmatprep.subr.bf16.mxu1 %v5270_v60  ;;  %v5357_v59 = vld [vmem:[#allocation7 + $0x944] ss:$16 sps:$4 sm:$0xff]   ;;  %v5360_v60 = vld [vmem:[#allocation7 + $0x94c] ss:$16 sps:$4 sm:$0xff]  }
 0x158   : > { %3563 = vmatpush1.bf16.msra.mxu0 %v5265_v61  ;;  %3907 = vmatpush1.bf16.msra.mxu1 %v5268_v62  ;;  %v5355_v61 = vld [vmem:[#allocation7 + $0x940] ss:$16 sps:$4 sm:$0xff]   ;;  %v5358_v62 = vld [vmem:[#allocation7 + $0x948] ss:$16 sps:$4 sm:$0xff]  }
 0x159   : > { %3564 = vmatprep.subr.bf16.mxu0 %v5273_v63  ;;  %3908 = vmatprep.subr.bf16.mxu1 %v5276_v0  ;;  %v5363_v63 = vld [vmem:[#allocation7 + $0x964] ss:$16 sps:$4 sm:$0xff]   ;;  %v5366_v0 = vld [vmem:[#allocation7 + $0x96c] ss:$16 sps:$4 sm:$0xff]  }
 0x15c   : > { %3565 = vmatpush1.bf16.msra.mxu0 %v5271_v1  ;;  %3909 = vmatpush1.bf16.msra.mxu1 %v5274_v2  ;;  %v5361_v1 = vld [vmem:[#allocation7 + $0x960] ss:$16 sps:$4 sm:$0xff]   ;;  %v5364_v2 = vld [vmem:[#allocation7 + $0x968] ss:$16 sps:$4 sm:$0xff]  }
 0x15d   : > { %3566 = vmatprep.subr.bf16.mxu0 %v5279_v3  ;;  %3910 = vmatprep.subr.bf16.mxu1 %v5282_v4  ;;  %v5369_v3 = vld [vmem:[#allocation7 + $0x984] ss:$16 sps:$4 sm:$0xff]   ;;  %v5372_v4 = vld [vmem:[#allocation7 + $0x98c] ss:$16 sps:$4 sm:$0xff]  }
 0x160   : > { %3567 = vmatpush1.bf16.msra.mxu0 %v5277_v5  ;;  %3911 = vmatpush1.bf16.msra.mxu1 %v5280_v6  ;;  %v5367_v5 = vld [vmem:[#allocation7 + $0x980] ss:$16 sps:$4 sm:$0xff]   ;;  %v5370_v6 = vld [vmem:[#allocation7 + $0x988] ss:$16 sps:$4 sm:$0xff]  }
 0x161   : > { %3568 = vmatprep.subr.bf16.mxu0 %v5285_v7  ;;  %3912 = vmatprep.subr.bf16.mxu1 %v5288_v8  ;;  %v5375_v7 = vld [vmem:[#allocation7 + $0x9a4] ss:$16 sps:$4 sm:$0xff]   ;;  %v5378_v8 = vld [vmem:[#allocation7 + $0x9ac] ss:$16 sps:$4 sm:$0xff]  }
 0x164   : > { %3569 = vmatpush1.bf16.msra.mxu0 %v5283_v9  ;;  %3913 = vmatpush1.bf16.msra.mxu1 %v5286_v10  ;;  %v5373_v9 = vld [vmem:[#allocation7 + $0x9a0] ss:$16 sps:$4 sm:$0xff]   ;;  %v5376_v10 = vld [vmem:[#allocation7 + $0x9a8] ss:$16 sps:$4 sm:$0xff]  }
 0x165   : > { %3570 = vmatprep.subr.bf16.mxu0 %v5291_v11  ;;  %3914 = vmatprep.subr.bf16.mxu1 %v5294_v12  ;;  %v5381_v11 = vld [vmem:[#allocation7 + $0x9c4] ss:$16 sps:$4 sm:$0xff]   ;;  %v5384_v12 = vld [vmem:[#allocation7 + $0x9cc] ss:$16 sps:$4 sm:$0xff]  }
 0x168   : > { %3571 = vmatpush1.bf16.msra.mxu0 %v5289_v13  ;;  %3915 = vmatpush1.bf16.msra.mxu1 %v5292_v16  ;;  %v5379_v13 = vld [vmem:[#allocation7 + $0x9c0] ss:$16 sps:$4 sm:$0xff]   ;;  %v5382_v16 = vld [vmem:[#allocation7 + $0x9c8] ss:$16 sps:$4 sm:$0xff]  }
 0x169   : > { %3583 = vmatprep.subr.bf16.mxu0 %v5297_v17  ;;  %3927 = vmatprep.subr.bf16.mxu1 %v5300_v20  ;;  %v5387_v17 = vld [vmem:[#allocation7 + $0x9e4] ss:$16 sps:$4 sm:$0xff]   ;;  %v5390_v20 = vld [vmem:[#allocation7 + $0x9ec] ss:$16 sps:$4 sm:$0xff]  }
 0x16b   : > { %3573 = vmatmul.mubr.bf16.vlgmr.msra.gmra.mrb[0].mxu0 %v4242_v22  ;;  %3917 = vmatmul.mubr.bf16.vlgmr.msra.gmra.mrb[0].mxu1 %v4242_v22  ;;  %v5385_v22 = vld [vmem:[#allocation7 + $0x9e0] ss:$16 sps:$4 sm:$0xff]  }
 0x16c   : > { %3584 = vmatpush1.bf16.msra.mxu0 %v5295_v24  ;;  %3928 = vmatpush1.bf16.msra.mxu1 %v5298_v14  ;;  %v5388_v24 = vld [vmem:[#allocation7 + $0x9e8] ss:$16 sps:$4 sm:$0xff]   ;;  %v5393_v14 = vld [vmem:[#allocation7 + $0xa04] ss:$16 sps:$4 sm:$0xff]  }
 0x16d   : > { %3585 = vmatprep.subr.bf16.mxu0 %v5303_v15  ;;  %3929 = vmatprep.subr.bf16.mxu1 %v5306_v25  ;;  %v5396_v15 = vld [vmem:[#allocation7 + $0xa0c] ss:$16 sps:$4 sm:$0xff]  }
 0x16e   : > { %3615 = vmatprep.mubr.bf16.mxu0 %v4245_v26  ;;  %3959 = vmatprep.mubr.bf16.mxu1 %v4245_v26  ;;  %v6099_v25 = vld [vmem:[%s6048_s6 + $0x28] sm:$0xff] }
 0x16f   : > { %v6102_v26 = vld [vmem:[%s6048_s6 + $0x68] sm:$0xff] }
 0x170   : > { %3586 = vmatpush1.bf16.msra.mxu0 %v5301_v27  ;;  %3930 = vmatpush1.bf16.msra.mxu1 %v5304_v28  ;;  %v4244_v27 = vcombine.low %v6089_v21, %v6094_v23  ;;  %v5391_v28 = vld [vmem:[#allocation7 + $0xa00] ss:$16 sps:$4 sm:$0xff]   ;;  %v5405_v21 = vld [vmem:[#allocation7 + $0xa44] ss:$16 sps:$4 sm:$0xff]   ;;  %v5408_v23 = vld [vmem:[#allocation7 + $0xa4c] ss:$16 sps:$4 sm:$0xff]  }
 0x171   : > { %3587 = vmatprep.subr.bf16.mxu0 %v5309_v18  ;;  %3931 = vmatprep.subr.bf16.mxu1 %v5312_v19  ;;  %v5394_v18 = vld [vmem:[#allocation7 + $0xa08] ss:$16 sps:$4 sm:$0xff]   ;;  %v5399_v19 = vld [vmem:[#allocation7 + $0xa24] ss:$16 sps:$4 sm:$0xff]  }
 0x174   : > { %3588 = vmatpush1.bf16.msra.mxu0 %v5307_v29  ;;  %3932 = vmatpush1.bf16.msra.mxu1 %v5310_v30  ;;  %v5402_v29 = vld [vmem:[#allocation7 + $0xa2c] ss:$16 sps:$4 sm:$0xff]   ;;  %v4247_v30 = vcombine.high %v6099_v25, %v6102_v26 }
 0x175   : > { %3589 = vmatprep.subr.bf16.mxu0 %v5315_v31  ;;  %3933 = vmatprep.subr.bf16.mxu1 %v5318_v32  ;;  %v5397_v31 = vld [vmem:[#allocation7 + $0xa20] ss:$16 sps:$4 sm:$0xff]   ;;  %v5400_v32 = vld [vmem:[#allocation7 + $0xa28] ss:$16 sps:$4 sm:$0xff]  }
 0x178   : > { %3590 = vmatpush1.bf16.msra.mxu0 %v5313_v33  ;;  %3934 = vmatpush1.bf16.msra.mxu1 %v5316_v34  ;;  %v5403_v33 = vld [vmem:[#allocation7 + $0xa40] ss:$16 sps:$4 sm:$0xff]   ;;  %v5406_v34 = vld [vmem:[#allocation7 + $0xa48] ss:$16 sps:$4 sm:$0xff]  }
 0x179   : > { %3591 = vmatprep.subr.bf16.mxu0 %v5321_v35  ;;  %3935 = vmatprep.subr.bf16.mxu1 %v5324_v36  ;;  %v5411_v35 = vld [vmem:[#allocation7 + $0xa64] ss:$16 sps:$4 sm:$0xff]   ;;  %v5414_v36 = vld [vmem:[#allocation7 + $0xa6c] ss:$16 sps:$4 sm:$0xff]  }
 0x17c   : > { %3592 = vmatpush1.bf16.msra.mxu0 %v5319_v37  ;;  %3936 = vmatpush1.bf16.msra.mxu1 %v5322_v38  ;;  %v5409_v37 = vld [vmem:[#allocation7 + $0xa60] ss:$16 sps:$4 sm:$0xff]   ;;  %v5412_v38 = vld [vmem:[#allocation7 + $0xa68] ss:$16 sps:$4 sm:$0xff]  }
 0x17d   : > { %3593 = vmatprep.subr.bf16.mxu0 %v5327_v39  ;;  %3937 = vmatprep.subr.bf16.mxu1 %v5330_v40  ;;  %v5417_v39 = vld [vmem:[#allocation7 + $0xa84] ss:$16 sps:$4 sm:$0xff]   ;;  %v5420_v40 = vld [vmem:[#allocation7 + $0xa8c] ss:$16 sps:$4 sm:$0xff]  }
 0x180   : > { %3594 = vmatpush1.bf16.msra.mxu0 %v5325_v41  ;;  %3938 = vmatpush1.bf16.msra.mxu1 %v5328_v42  ;;  %v5415_v41 = vld [vmem:[#allocation7 + $0xa80] ss:$16 sps:$4 sm:$0xff]   ;;  %v5418_v42 = vld [vmem:[#allocation7 + $0xa88] ss:$16 sps:$4 sm:$0xff]  }
 0x181   : > { %3595 = vmatprep.subr.bf16.mxu0 %v5333_v43  ;;  %3939 = vmatprep.subr.bf16.mxu1 %v5336_v44  ;;  %v5423_v43 = vld [vmem:[#allocation7 + $0xaa4] ss:$16 sps:$4 sm:$0xff]   ;;  %v5426_v44 = vld [vmem:[#allocation7 + $0xaac] ss:$16 sps:$4 sm:$0xff]  }
 0x184   : > { %3596 = vmatpush1.bf16.msra.mxu0 %v5331_v45  ;;  %3940 = vmatpush1.bf16.msra.mxu1 %v5334_v46  ;;  %v5421_v45 = vld [vmem:[#allocation7 + $0xaa0] ss:$16 sps:$4 sm:$0xff]   ;;  %v5424_v46 = vld [vmem:[#allocation7 + $0xaa8] ss:$16 sps:$4 sm:$0xff]  }
 0x185   : > { %3597 = vmatprep.subr.bf16.mxu0 %v5339_v47  ;;  %3941 = vmatprep.subr.bf16.mxu1 %v5342_v48  ;;  %v5429_v47 = vld [vmem:[#allocation7 + $0xac4] ss:$16 sps:$4 sm:$0xff]   ;;  %v5432_v48 = vld [vmem:[#allocation7 + $0xacc] ss:$16 sps:$4 sm:$0xff]  }
 0x188   : > { %3598 = vmatpush1.bf16.msra.mxu0 %v5337_v49  ;;  %3942 = vmatpush1.bf16.msra.mxu1 %v5340_v50  ;;  %v5427_v49 = vld [vmem:[#allocation7 + $0xac0] ss:$16 sps:$4 sm:$0xff]   ;;  %v5430_v50 = vld [vmem:[#allocation7 + $0xac8] ss:$16 sps:$4 sm:$0xff]  }
 0x189   : > { %3599 = vmatprep.subr.bf16.mxu0 %v5345_v51  ;;  %3943 = vmatprep.subr.bf16.mxu1 %v5348_v52  ;;  %v5435_v51 = vld [vmem:[#allocation7 + $0xae4] ss:$16 sps:$4 sm:$0xff]   ;;  %v5438_v52 = vld [vmem:[#allocation7 + $0xaec] ss:$16 sps:$4 sm:$0xff]  }
 0x18c   : > { %3600 = vmatpush1.bf16.msra.mxu0 %v5343_v53  ;;  %3944 = vmatpush1.bf16.msra.mxu1 %v5346_v54  ;;  %v5433_v53 = vld [vmem:[#allocation7 + $0xae0] ss:$16 sps:$4 sm:$0xff]   ;;  %v5436_v54 = vld [vmem:[#allocation7 + $0xae8] ss:$16 sps:$4 sm:$0xff]  }
 0x18d   : > { %3601 = vmatprep.subr.bf16.mxu0 %v5351_v55  ;;  %3945 = vmatprep.subr.bf16.mxu1 %v5354_v56  ;;  %v5441_v55 = vld [vmem:[#allocation7 + $0xb04] ss:$16 sps:$4 sm:$0xff]   ;;  %v5444_v56 = vld [vmem:[#allocation7 + $0xb0c] ss:$16 sps:$4 sm:$0xff]  }
 0x190   : > { %3602 = vmatpush1.bf16.msra.mxu0 %v5349_v57  ;;  %3946 = vmatpush1.bf16.msra.mxu1 %v5352_v58  ;;  %v5439_v57 = vld [vmem:[#allocation7 + $0xb00] ss:$16 sps:$4 sm:$0xff]   ;;  %v5442_v58 = vld [vmem:[#allocation7 + $0xb08] ss:$16 sps:$4 sm:$0xff]  }
 0x191   : > { %3603 = vmatprep.subr.bf16.mxu0 %v5357_v59  ;;  %3947 = vmatprep.subr.bf16.mxu1 %v5360_v60  ;;  %v5447_v59 = vld [vmem:[#allocation7 + $0xb24] ss:$16 sps:$4 sm:$0xff]   ;;  %v5450_v60 = vld [vmem:[#allocation7 + $0xb2c] ss:$16 sps:$4 sm:$0xff]  }
 0x194   : > { %3604 = vmatpush1.bf16.msra.mxu0 %v5355_v61  ;;  %3948 = vmatpush1.bf16.msra.mxu1 %v5358_v62  ;;  %v5445_v61 = vld [vmem:[#allocation7 + $0xb20] ss:$16 sps:$4 sm:$0xff]   ;;  %v5448_v62 = vld [vmem:[#allocation7 + $0xb28] ss:$16 sps:$4 sm:$0xff]  }
 0x195   : > { %3605 = vmatprep.subr.bf16.mxu0 %v5363_v63  ;;  %3949 = vmatprep.subr.bf16.mxu1 %v5366_v0  ;;  %v5453_v63 = vld [vmem:[#allocation7 + $0xb44] ss:$16 sps:$4 sm:$0xff]   ;;  %v5456_v0 = vld [vmem:[#allocation7 + $0xb4c] ss:$16 sps:$4 sm:$0xff]  }
 0x198   : > { %3606 = vmatpush1.bf16.msra.mxu0 %v5361_v1  ;;  %3950 = vmatpush1.bf16.msra.mxu1 %v5364_v2  ;;  %v5451_v1 = vld [vmem:[#allocation7 + $0xb40] ss:$16 sps:$4 sm:$0xff]   ;;  %v5454_v2 = vld [vmem:[#allocation7 + $0xb48] ss:$16 sps:$4 sm:$0xff]  }
 0x199   : > { %3607 = vmatprep.subr.bf16.mxu0 %v5369_v3  ;;  %3951 = vmatprep.subr.bf16.mxu1 %v5372_v4  ;;  %v5459_v3 = vld [vmem:[#allocation7 + $0xb64] ss:$16 sps:$4 sm:$0xff]   ;;  %v5462_v4 = vld [vmem:[#allocation7 + $0xb6c] ss:$16 sps:$4 sm:$0xff]  }
 0x19c   : > { %3608 = vmatpush1.bf16.msra.mxu0 %v5367_v5  ;;  %3952 = vmatpush1.bf16.msra.mxu1 %v5370_v6  ;;  %v5457_v5 = vld [vmem:[#allocation7 + $0xb60] ss:$16 sps:$4 sm:$0xff]   ;;  %v5460_v6 = vld [vmem:[#allocation7 + $0xb68] ss:$16 sps:$4 sm:$0xff]  }
 0x19d   : > { %3609 = vmatprep.subr.bf16.mxu0 %v5375_v7  ;;  %3953 = vmatprep.subr.bf16.mxu1 %v5378_v8  ;;  %v5465_v7 = vld [vmem:[#allocation7 + $0xb84] ss:$16 sps:$4 sm:$0xff]   ;;  %v5468_v8 = vld [vmem:[#allocation7 + $0xb8c] ss:$16 sps:$4 sm:$0xff]  }
 0x1a0   : > { %3610 = vmatpush1.bf16.msra.mxu0 %v5373_v9  ;;  %3954 = vmatpush1.bf16.msra.mxu1 %v5376_v10  ;;  %v5463_v9 = vld [vmem:[#allocation7 + $0xb80] ss:$16 sps:$4 sm:$0xff]   ;;  %v5466_v10 = vld [vmem:[#allocation7 + $0xb88] ss:$16 sps:$4 sm:$0xff]  }
 0x1a1   : > { %3611 = vmatprep.subr.bf16.mxu0 %v5381_v11  ;;  %3955 = vmatprep.subr.bf16.mxu1 %v5384_v12  ;;  %v5471_v11 = vld [vmem:[#allocation7 + $0xba4] ss:$16 sps:$4 sm:$0xff]   ;;  %v5474_v12 = vld [vmem:[#allocation7 + $0xbac] ss:$16 sps:$4 sm:$0xff]  }
 0x1a4   : > { %3612 = vmatpush1.bf16.msra.mxu0 %v5379_v13  ;;  %3956 = vmatpush1.bf16.msra.mxu1 %v5382_v16  ;;  %v5469_v13 = vld [vmem:[#allocation7 + $0xba0] ss:$16 sps:$4 sm:$0xff]   ;;  %v5472_v16 = vld [vmem:[#allocation7 + $0xba8] ss:$16 sps:$4 sm:$0xff]  }
 0x1a5   : > { %3613 = vmatprep.subr.bf16.mxu0 %v5387_v17  ;;  %3957 = vmatprep.subr.bf16.mxu1 %v5390_v20  ;;  %v5477_v17 = vld [vmem:[#allocation7 + $0xbc4] ss:$16 sps:$4 sm:$0xff]   ;;  %v5480_v20 = vld [vmem:[#allocation7 + $0xbcc] ss:$16 sps:$4 sm:$0xff]  }
 0x1a8   : > { %3614 = vmatpush1.bf16.msra.mxu0 %v5385_v22  ;;  %3958 = vmatpush1.bf16.msra.mxu1 %v5388_v24  ;;  %v5475_v22 = vld [vmem:[#allocation7 + $0xbc0] ss:$16 sps:$4 sm:$0xff]   ;;  %v5478_v24 = vld [vmem:[#allocation7 + $0xbc8] ss:$16 sps:$4 sm:$0xff]  }
 0x1a9   : > { %3626 = vmatprep.subr.bf16.mxu0 %v5393_v14  ;;  %3970 = vmatprep.subr.bf16.mxu1 %v5396_v15  ;;  %v5483_v14 = vld [vmem:[#allocation7 + $0xbe4] ss:$16 sps:$4 sm:$0xff]   ;;  %v5486_v15 = vld [vmem:[#allocation7 + $0xbec] ss:$16 sps:$4 sm:$0xff]  }
 0x1ab   : > { %3616 = vmatmul.mubr.bf16.vlgmr.msra.gmra.mrb[0].mxu0 %v4244_v27  ;;  %3960 = vmatmul.mubr.bf16.vlgmr.msra.gmra.mrb[0].mxu1 %v4244_v27  ;;  %v5481_v27 = vld [vmem:[#allocation7 + $0xbe0] ss:$16 sps:$4 sm:$0xff]  }
 0x1ac   : > { %3627 = vmatpush1.bf16.msra.mxu0 %v5391_v28  ;;  %3971 = vmatpush1.bf16.msra.mxu1 %v5394_v18  ;;  %v5484_v28 = vld [vmem:[#allocation7 + $0xbe8] ss:$16 sps:$4 sm:$0xff]   ;;  %v5489_v18 = vld [vmem:[#allocation7 + $0xc04] ss:$16 sps:$4 sm:$0xff]  }
 0x1ad   : > { %3628 = vmatprep.subr.bf16.mxu0 %v5399_v19  ;;  %3972 = vmatprep.subr.bf16.mxu1 %v5402_v29  ;;  %v5492_v19 = vld [vmem:[#allocation7 + $0xc0c] ss:$16 sps:$4 sm:$0xff]   ;;  %v4246_v29 = vcombine.low %v6099_v25, %v6102_v26  ;;  %v5493_v25 = vld [vmem:[#allocation7 + $0xc20] ss:$16 sps:$4 sm:$0xff]   ;;  %v5496_v26 = vld [vmem:[#allocation7 + $0xc28] ss:$16 sps:$4 sm:$0xff]  }
 0x1ae   : > { %3658 = vmatprep.mubr.bf16.mxu0 %v4247_v30  ;;  %4002 = vmatprep.mubr.bf16.mxu1 %v4247_v30  ;;  %v6111_v30 = vld [vmem:[%s6048_s6 + $0x30] sm:$0xff] }
 0x1b0   : > { %3629 = vmatpush1.bf16.msra.mxu0 %v5397_v31  ;;  %3973 = vmatpush1.bf16.msra.mxu1 %v5400_v32  ;;  %v6114_v31 = vld [vmem:[%s6048_s6 + $0x70] sm:$0xff] }
 0x1b1   : > { %3630 = vmatprep.subr.bf16.mxu0 %v5405_v21  ;;  %3974 = vmatprep.subr.bf16.mxu1 %v5408_v23  ;;  %v5487_v32 = vld [vmem:[#allocation7 + $0xc00] ss:$16 sps:$4 sm:$0xff]   ;;  %v5490_v21 = vld [vmem:[#allocation7 + $0xc08] ss:$16 sps:$4 sm:$0xff]   ;;  %v5495_v23 = vld [vmem:[#allocation7 + $0xc24] ss:$16 sps:$4 sm:$0xff]  }
 0x1b4   : > { %3631 = vmatpush1.bf16.msra.mxu0 %v5403_v33  ;;  %3975 = vmatpush1.bf16.msra.mxu1 %v5406_v34  ;;  %v5498_v33 = vld [vmem:[#allocation7 + $0xc2c] ss:$16 sps:$4 sm:$0xff]   ;;  %v4249_v34 = vcombine.high %v6111_v30, %v6114_v31 }
 0x1b5   : > { %3632 = vmatprep.subr.bf16.mxu0 %v5411_v35  ;;  %3976 = vmatprep.subr.bf16.mxu1 %v5414_v36  ;;  %v5501_v35 = vld [vmem:[#allocation7 + $0xc44] ss:$16 sps:$4 sm:$0xff]   ;;  %v5504_v36 = vld [vmem:[#allocation7 + $0xc4c] ss:$16 sps:$4 sm:$0xff]  }
 0x1b8   : > { %3633 = vmatpush1.bf16.msra.mxu0 %v5409_v37  ;;  %3977 = vmatpush1.bf16.msra.mxu1 %v5412_v38  ;;  %v5499_v37 = vld [vmem:[#allocation7 + $0xc40] ss:$16 sps:$4 sm:$0xff]   ;;  %v5502_v38 = vld [vmem:[#allocation7 + $0xc48] ss:$16 sps:$4 sm:$0xff]  }
 0x1b9   : > { %3634 = vmatprep.subr.bf16.mxu0 %v5417_v39  ;;  %3978 = vmatprep.subr.bf16.mxu1 %v5420_v40  ;;  %v5507_v39 = vld [vmem:[#allocation7 + $0xc64] ss:$16 sps:$4 sm:$0xff]   ;;  %v5510_v40 = vld [vmem:[#allocation7 + $0xc6c] ss:$16 sps:$4 sm:$0xff]  }
 0x1bc   : > { %3635 = vmatpush1.bf16.msra.mxu0 %v5415_v41  ;;  %3979 = vmatpush1.bf16.msra.mxu1 %v5418_v42  ;;  %v5505_v41 = vld [vmem:[#allocation7 + $0xc60] ss:$16 sps:$4 sm:$0xff]   ;;  %v5508_v42 = vld [vmem:[#allocation7 + $0xc68] ss:$16 sps:$4 sm:$0xff]  }
 0x1bd   : > { %3636 = vmatprep.subr.bf16.mxu0 %v5423_v43  ;;  %3980 = vmatprep.subr.bf16.mxu1 %v5426_v44  ;;  %v5513_v43 = vld [vmem:[#allocation7 + $0xc84] ss:$16 sps:$4 sm:$0xff]   ;;  %v5516_v44 = vld [vmem:[#allocation7 + $0xc8c] ss:$16 sps:$4 sm:$0xff]  }
 0x1c0   : > { %3637 = vmatpush1.bf16.msra.mxu0 %v5421_v45  ;;  %3981 = vmatpush1.bf16.msra.mxu1 %v5424_v46  ;;  %v5511_v45 = vld [vmem:[#allocation7 + $0xc80] ss:$16 sps:$4 sm:$0xff]   ;;  %v5514_v46 = vld [vmem:[#allocation7 + $0xc88] ss:$16 sps:$4 sm:$0xff]  }
 0x1c1   : > { %3638 = vmatprep.subr.bf16.mxu0 %v5429_v47  ;;  %3982 = vmatprep.subr.bf16.mxu1 %v5432_v48  ;;  %v5519_v47 = vld [vmem:[#allocation7 + $0xca4] ss:$16 sps:$4 sm:$0xff]   ;;  %v5522_v48 = vld [vmem:[#allocation7 + $0xcac] ss:$16 sps:$4 sm:$0xff]  }
 0x1c4   : > { %3639 = vmatpush1.bf16.msra.mxu0 %v5427_v49  ;;  %3983 = vmatpush1.bf16.msra.mxu1 %v5430_v50  ;;  %v5517_v49 = vld [vmem:[#allocation7 + $0xca0] ss:$16 sps:$4 sm:$0xff]   ;;  %v5520_v50 = vld [vmem:[#allocation7 + $0xca8] ss:$16 sps:$4 sm:$0xff]  }
 0x1c5   : > { %3640 = vmatprep.subr.bf16.mxu0 %v5435_v51  ;;  %3984 = vmatprep.subr.bf16.mxu1 %v5438_v52  ;;  %v5525_v51 = vld [vmem:[#allocation7 + $0xcc4] ss:$16 sps:$4 sm:$0xff]   ;;  %v5528_v52 = vld [vmem:[#allocation7 + $0xccc] ss:$16 sps:$4 sm:$0xff]  }
 0x1c8   : > { %3641 = vmatpush1.bf16.msra.mxu0 %v5433_v53  ;;  %3985 = vmatpush1.bf16.msra.mxu1 %v5436_v54  ;;  %v5523_v53 = vld [vmem:[#allocation7 + $0xcc0] ss:$16 sps:$4 sm:$0xff]   ;;  %v5526_v54 = vld [vmem:[#allocation7 + $0xcc8] ss:$16 sps:$4 sm:$0xff]  }
 0x1c9   : > { %3642 = vmatprep.subr.bf16.mxu0 %v5441_v55  ;;  %3986 = vmatprep.subr.bf16.mxu1 %v5444_v56  ;;  %v5531_v55 = vld [vmem:[#allocation7 + $0xce4] ss:$16 sps:$4 sm:$0xff]   ;;  %v5534_v56 = vld [vmem:[#allocation7 + $0xcec] ss:$16 sps:$4 sm:$0xff]  }
 0x1cc   : > { %3643 = vmatpush1.bf16.msra.mxu0 %v5439_v57  ;;  %3987 = vmatpush1.bf16.msra.mxu1 %v5442_v58  ;;  %v5529_v57 = vld [vmem:[#allocation7 + $0xce0] ss:$16 sps:$4 sm:$0xff]   ;;  %v5532_v58 = vld [vmem:[#allocation7 + $0xce8] ss:$16 sps:$4 sm:$0xff]  }
 0x1cd   : > { %3644 = vmatprep.subr.bf16.mxu0 %v5447_v59  ;;  %3988 = vmatprep.subr.bf16.mxu1 %v5450_v60  ;;  %v5537_v59 = vld [vmem:[#allocation7 + $0xd04] ss:$16 sps:$4 sm:$0xff]   ;;  %v5540_v60 = vld [vmem:[#allocation7 + $0xd0c] ss:$16 sps:$4 sm:$0xff]  }
 0x1d0   : > { %3645 = vmatpush1.bf16.msra.mxu0 %v5445_v61  ;;  %3989 = vmatpush1.bf16.msra.mxu1 %v5448_v62  ;;  %v5535_v61 = vld [vmem:[#allocation7 + $0xd00] ss:$16 sps:$4 sm:$0xff]   ;;  %v5538_v62 = vld [vmem:[#allocation7 + $0xd08] ss:$16 sps:$4 sm:$0xff]  }
 0x1d1   : > { %3646 = vmatprep.subr.bf16.mxu0 %v5453_v63  ;;  %3990 = vmatprep.subr.bf16.mxu1 %v5456_v0  ;;  %v5543_v63 = vld [vmem:[#allocation7 + $0xd24] ss:$16 sps:$4 sm:$0xff]   ;;  %v5546_v0 = vld [vmem:[#allocation7 + $0xd2c] ss:$16 sps:$4 sm:$0xff]  }
 0x1d4   : > { %3647 = vmatpush1.bf16.msra.mxu0 %v5451_v1  ;;  %3991 = vmatpush1.bf16.msra.mxu1 %v5454_v2  ;;  %v5541_v1 = vld [vmem:[#allocation7 + $0xd20] ss:$16 sps:$4 sm:$0xff]   ;;  %v5544_v2 = vld [vmem:[#allocation7 + $0xd28] ss:$16 sps:$4 sm:$0xff]  }
 0x1d5   : > { %3648 = vmatprep.subr.bf16.mxu0 %v5459_v3  ;;  %3992 = vmatprep.subr.bf16.mxu1 %v5462_v4  ;;  %v5549_v3 = vld [vmem:[#allocation7 + $0xd44] ss:$16 sps:$4 sm:$0xff]   ;;  %v5552_v4 = vld [vmem:[#allocation7 + $0xd4c] ss:$16 sps:$4 sm:$0xff]  }
 0x1d8   : > { %3649 = vmatpush1.bf16.msra.mxu0 %v5457_v5  ;;  %3993 = vmatpush1.bf16.msra.mxu1 %v5460_v6  ;;  %v5547_v5 = vld [vmem:[#allocation7 + $0xd40] ss:$16 sps:$4 sm:$0xff]   ;;  %v5550_v6 = vld [vmem:[#allocation7 + $0xd48] ss:$16 sps:$4 sm:$0xff]  }
 0x1d9   : > { %3650 = vmatprep.subr.bf16.mxu0 %v5465_v7  ;;  %3994 = vmatprep.subr.bf16.mxu1 %v5468_v8  ;;  %v5555_v7 = vld [vmem:[#allocation7 + $0xd64] ss:$16 sps:$4 sm:$0xff]   ;;  %v5558_v8 = vld [vmem:[#allocation7 + $0xd6c] ss:$16 sps:$4 sm:$0xff]  }
 0x1dc   : > { %3651 = vmatpush1.bf16.msra.mxu0 %v5463_v9  ;;  %3995 = vmatpush1.bf16.msra.mxu1 %v5466_v10  ;;  %v5553_v9 = vld [vmem:[#allocation7 + $0xd60] ss:$16 sps:$4 sm:$0xff]   ;;  %v5556_v10 = vld [vmem:[#allocation7 + $0xd68] ss:$16 sps:$4 sm:$0xff]  }
 0x1dd   : > { %3652 = vmatprep.subr.bf16.mxu0 %v5471_v11  ;;  %3996 = vmatprep.subr.bf16.mxu1 %v5474_v12  ;;  %v5561_v11 = vld [vmem:[#allocation7 + $0xd84] ss:$16 sps:$4 sm:$0xff]   ;;  %v5564_v12 = vld [vmem:[#allocation7 + $0xd8c] ss:$16 sps:$4 sm:$0xff]  }
 0x1e0   : > { %3653 = vmatpush1.bf16.msra.mxu0 %v5469_v13  ;;  %3997 = vmatpush1.bf16.msra.mxu1 %v5472_v16  ;;  %v5559_v13 = vld [vmem:[#allocation7 + $0xd80] ss:$16 sps:$4 sm:$0xff]   ;;  %v5562_v16 = vld [vmem:[#allocation7 + $0xd88] ss:$16 sps:$4 sm:$0xff]  }
 0x1e1   : > { %3654 = vmatprep.subr.bf16.mxu0 %v5477_v17  ;;  %3998 = vmatprep.subr.bf16.mxu1 %v5480_v20  ;;  %v5567_v17 = vld [vmem:[#allocation7 + $0xda4] ss:$16 sps:$4 sm:$0xff]   ;;  %v5570_v20 = vld [vmem:[#allocation7 + $0xdac] ss:$16 sps:$4 sm:$0xff]  }
 0x1e4   : > { %3655 = vmatpush1.bf16.msra.mxu0 %v5475_v22  ;;  %3999 = vmatpush1.bf16.msra.mxu1 %v5478_v24  ;;  %v5565_v22 = vld [vmem:[#allocation7 + $0xda0] ss:$16 sps:$4 sm:$0xff]   ;;  %v5568_v24 = vld [vmem:[#allocation7 + $0xda8] ss:$16 sps:$4 sm:$0xff]  }
 0x1e5   : > { %3656 = vmatprep.subr.bf16.mxu0 %v5483_v14  ;;  %4000 = vmatprep.subr.bf16.mxu1 %v5486_v15  ;;  %v5573_v14 = vld [vmem:[#allocation7 + $0xdc4] ss:$16 sps:$4 sm:$0xff]   ;;  %v5576_v15 = vld [vmem:[#allocation7 + $0xdcc] ss:$16 sps:$4 sm:$0xff]  }
 0x1e8   : > { %3657 = vmatpush1.bf16.msra.mxu0 %v5481_v27  ;;  %4001 = vmatpush1.bf16.msra.mxu1 %v5484_v28  ;;  %v5571_v27 = vld [vmem:[#allocation7 + $0xdc0] ss:$16 sps:$4 sm:$0xff]   ;;  %v5574_v28 = vld [vmem:[#allocation7 + $0xdc8] ss:$16 sps:$4 sm:$0xff]  }
 0x1e9   : > { %3669 = vmatprep.subr.bf16.mxu0 %v5489_v18  ;;  %4013 = vmatprep.subr.bf16.mxu1 %v5492_v19  ;;  %v5579_v18 = vld [vmem:[#allocation7 + $0xde4] ss:$16 sps:$4 sm:$0xff]   ;;  %v5582_v19 = vld [vmem:[#allocation7 + $0xdec] ss:$16 sps:$4 sm:$0xff]  }
 0x1eb   : > { %3659 = vmatmul.mubr.bf16.vlgmr.msra.gmra.mrb[0].mxu0 %v4246_v29  ;;  %4003 = vmatmul.mubr.bf16.vlgmr.msra.gmra.mrb[0].mxu1 %v4246_v29  ;;  %v5577_v29 = vld [vmem:[#allocation7 + $0xde0] ss:$16 sps:$4 sm:$0xff]  }
 0x1ec   : > { %3670 = vmatpush1.bf16.msra.mxu0 %v5487_v32  ;;  %4014 = vmatpush1.bf16.msra.mxu1 %v5490_v21  ;;  %v5580_v32 = vld [vmem:[#allocation7 + $0xde8] ss:$16 sps:$4 sm:$0xff]   ;;  %v5585_v21 = vld [vmem:[#allocation7 + $0xe04] ss:$16 sps:$4 sm:$0xff]  }
 0x1ed   : > { %3671 = vmatprep.subr.bf16.mxu0 %v5495_v23  ;;  %4015 = vmatprep.subr.bf16.mxu1 %v5498_v33  ;;  %v5588_v23 = vld [vmem:[#allocation7 + $0xe0c] ss:$16 sps:$4 sm:$0xff]   ;;  %v4248_v33 = vcombine.low %v6111_v30, %v6114_v31  ;;  %v5589_v30 = vld [vmem:[#allocation7 + $0xe20] ss:$16 sps:$4 sm:$0xff]   ;;  %v5592_v31 = vld [vmem:[#allocation7 + $0xe28] ss:$16 sps:$4 sm:$0xff]  }
 0x1ee   : > { %3701 = vmatprep.mubr.bf16.mxu0 %v4249_v34  ;;  %4045 = vmatprep.mubr.bf16.mxu1 %v4249_v34  ;;  %v6121_v34 = vld [vmem:[%s6048_s6 + $0x38] sm:$0xff] }
 0x1f0   : > { %3672 = vmatpush1.bf16.msra.mxu0 %v5493_v25  ;;  %4016 = vmatpush1.bf16.msra.mxu1 %v5496_v26  ;;  %v6124_v25 = vld [vmem:[%s6048_s6 + $0x78] sm:$0xff]  ;;  %v5583_v26 = vld [vmem:[#allocation7 + $0xe00] ss:$16 sps:$4 sm:$0xff]  }
 0x1f1   : > { %3673 = vmatprep.subr.bf16.mxu0 %v5501_v35  ;;  %4017 = vmatprep.subr.bf16.mxu1 %v5504_v36  ;;  %v5586_v35 = vld [vmem:[#allocation7 + $0xe08] ss:$16 sps:$4 sm:$0xff]   ;;  %v5591_v36 = vld [vmem:[#allocation7 + $0xe24] ss:$16 sps:$4 sm:$0xff]  }
 0x1f4   : > { %3674 = vmatpush1.bf16.msra.mxu0 %v5499_v37  ;;  %4018 = vmatpush1.bf16.msra.mxu1 %v5502_v38  ;;  %v5594_v37 = vld [vmem:[#allocation7 + $0xe2c] ss:$16 sps:$4 sm:$0xff]   ;;  %v4251_v38 = vcombine.high %v6121_v34, %v6124_v25 }
 0x1f5   : > { %3675 = vmatprep.subr.bf16.mxu0 %v5507_v39  ;;  %4019 = vmatprep.subr.bf16.mxu1 %v5510_v40  ;;  %v5597_v39 = vld [vmem:[#allocation7 + $0xe44] ss:$16 sps:$4 sm:$0xff]   ;;  %v5600_v40 = vld [vmem:[#allocation7 + $0xe4c] ss:$16 sps:$4 sm:$0xff]  }
 0x1f8   : > { %3676 = vmatpush1.bf16.msra.mxu0 %v5505_v41  ;;  %4020 = vmatpush1.bf16.msra.mxu1 %v5508_v42  ;;  %v5595_v41 = vld [vmem:[#allocation7 + $0xe40] ss:$16 sps:$4 sm:$0xff]   ;;  %v5598_v42 = vld [vmem:[#allocation7 + $0xe48] ss:$16 sps:$4 sm:$0xff]  }
 0x1f9   : > { %3677 = vmatprep.subr.bf16.mxu0 %v5513_v43  ;;  %4021 = vmatprep.subr.bf16.mxu1 %v5516_v44  ;;  %v5603_v43 = vld [vmem:[#allocation7 + $0xe64] ss:$16 sps:$4 sm:$0xff]   ;;  %v5606_v44 = vld [vmem:[#allocation7 + $0xe6c] ss:$16 sps:$4 sm:$0xff]  }
 0x1fc   : > { %3678 = vmatpush1.bf16.msra.mxu0 %v5511_v45  ;;  %4022 = vmatpush1.bf16.msra.mxu1 %v5514_v46  ;;  %v5601_v45 = vld [vmem:[#allocation7 + $0xe60] ss:$16 sps:$4 sm:$0xff]   ;;  %v5604_v46 = vld [vmem:[#allocation7 + $0xe68] ss:$16 sps:$4 sm:$0xff]  }
 0x1fd   : > { %3679 = vmatprep.subr.bf16.mxu0 %v5519_v47  ;;  %4023 = vmatprep.subr.bf16.mxu1 %v5522_v48  ;;  %v5609_v47 = vld [vmem:[#allocation7 + $0xe84] ss:$16 sps:$4 sm:$0xff]   ;;  %v5612_v48 = vld [vmem:[#allocation7 + $0xe8c] ss:$16 sps:$4 sm:$0xff]  }
 0x200   : > { %3680 = vmatpush1.bf16.msra.mxu0 %v5517_v49  ;;  %4024 = vmatpush1.bf16.msra.mxu1 %v5520_v50  ;;  %v5607_v49 = vld [vmem:[#allocation7 + $0xe80] ss:$16 sps:$4 sm:$0xff]   ;;  %v5610_v50 = vld [vmem:[#allocation7 + $0xe88] ss:$16 sps:$4 sm:$0xff]  }
 0x201   : > { %3681 = vmatprep.subr.bf16.mxu0 %v5525_v51  ;;  %4025 = vmatprep.subr.bf16.mxu1 %v5528_v52  ;;  %v5615_v51 = vld [vmem:[#allocation7 + $0xea4] ss:$16 sps:$4 sm:$0xff]   ;;  %v5618_v52 = vld [vmem:[#allocation7 + $0xeac] ss:$16 sps:$4 sm:$0xff]  }
 0x204   : > { %3682 = vmatpush1.bf16.msra.mxu0 %v5523_v53  ;;  %4026 = vmatpush1.bf16.msra.mxu1 %v5526_v54  ;;  %v5613_v53 = vld [vmem:[#allocation7 + $0xea0] ss:$16 sps:$4 sm:$0xff]   ;;  %v5616_v54 = vld [vmem:[#allocation7 + $0xea8] ss:$16 sps:$4 sm:$0xff]  }
 0x205   : > { %3683 = vmatprep.subr.bf16.mxu0 %v5531_v55  ;;  %4027 = vmatprep.subr.bf16.mxu1 %v5534_v56  ;;  %v5621_v55 = vld [vmem:[#allocation7 + $0xec4] ss:$16 sps:$4 sm:$0xff]   ;;  %v5624_v56 = vld [vmem:[#allocation7 + $0xecc] ss:$16 sps:$4 sm:$0xff]  }
 0x208   : > { %3684 = vmatpush1.bf16.msra.mxu0 %v5529_v57  ;;  %4028 = vmatpush1.bf16.msra.mxu1 %v5532_v58  ;;  %v5619_v57 = vld [vmem:[#allocation7 + $0xec0] ss:$16 sps:$4 sm:$0xff]   ;;  %v5622_v58 = vld [vmem:[#allocation7 + $0xec8] ss:$16 sps:$4 sm:$0xff]  }
 0x209   : > { %3685 = vmatprep.subr.bf16.mxu0 %v5537_v59  ;;  %4029 = vmatprep.subr.bf16.mxu1 %v5540_v60  ;;  %v5627_v59 = vld [vmem:[#allocation7 + $0xee4] ss:$16 sps:$4 sm:$0xff]   ;;  %v5630_v60 = vld [vmem:[#allocation7 + $0xeec] ss:$16 sps:$4 sm:$0xff]  }
 0x20c   : > { %3686 = vmatpush1.bf16.msra.mxu0 %v5535_v61  ;;  %4030 = vmatpush1.bf16.msra.mxu1 %v5538_v62  ;;  %v5625_v61 = vld [vmem:[#allocation7 + $0xee0] ss:$16 sps:$4 sm:$0xff]   ;;  %v5628_v62 = vld [vmem:[#allocation7 + $0xee8] ss:$16 sps:$4 sm:$0xff]  }
 0x20d   : > { %3687 = vmatprep.subr.bf16.mxu0 %v5543_v63  ;;  %4031 = vmatprep.subr.bf16.mxu1 %v5546_v0  ;;  %v5633_v63 = vld [vmem:[#allocation7 + $0xf04] ss:$16 sps:$4 sm:$0xff]   ;;  %v5636_v0 = vld [vmem:[#allocation7 + $0xf0c] ss:$16 sps:$4 sm:$0xff]  }
 0x210   : > { %3688 = vmatpush1.bf16.msra.mxu0 %v5541_v1  ;;  %4032 = vmatpush1.bf16.msra.mxu1 %v5544_v2  ;;  %v5631_v1 = vld [vmem:[#allocation7 + $0xf00] ss:$16 sps:$4 sm:$0xff]   ;;  %v5634_v2 = vld [vmem:[#allocation7 + $0xf08] ss:$16 sps:$4 sm:$0xff]  }
 0x211   : > { %3689 = vmatprep.subr.bf16.mxu0 %v5549_v3  ;;  %4033 = vmatprep.subr.bf16.mxu1 %v5552_v4  ;;  %v5639_v3 = vld [vmem:[#allocation7 + $0xf24] ss:$16 sps:$4 sm:$0xff]   ;;  %v5642_v4 = vld [vmem:[#allocation7 + $0xf2c] ss:$16 sps:$4 sm:$0xff]  }
 0x214   : > { %3690 = vmatpush1.bf16.msra.mxu0 %v5547_v5  ;;  %4034 = vmatpush1.bf16.msra.mxu1 %v5550_v6  ;;  %v5637_v5 = vld [vmem:[#allocation7 + $0xf20] ss:$16 sps:$4 sm:$0xff]   ;;  %v5640_v6 = vld [vmem:[#allocation7 + $0xf28] ss:$16 sps:$4 sm:$0xff]  }
 0x215   : > { %3691 = vmatprep.subr.bf16.mxu0 %v5555_v7  ;;  %4035 = vmatprep.subr.bf16.mxu1 %v5558_v8  ;;  %v5645_v7 = vld [vmem:[#allocation7 + $0xf44] ss:$16 sps:$4 sm:$0xff]   ;;  %v5648_v8 = vld [vmem:[#allocation7 + $0xf4c] ss:$16 sps:$4 sm:$0xff]  }
 0x218   : > { %3692 = vmatpush1.bf16.msra.mxu0 %v5553_v9  ;;  %4036 = vmatpush1.bf16.msra.mxu1 %v5556_v10  ;;  %v5643_v9 = vld [vmem:[#allocation7 + $0xf40] ss:$16 sps:$4 sm:$0xff]   ;;  %v5646_v10 = vld [vmem:[#allocation7 + $0xf48] ss:$16 sps:$4 sm:$0xff]  }
 0x219   : > { %3693 = vmatprep.subr.bf16.mxu0 %v5561_v11  ;;  %4037 = vmatprep.subr.bf16.mxu1 %v5564_v12  ;;  %v5651_v11 = vld [vmem:[#allocation7 + $0xf64] ss:$16 sps:$4 sm:$0xff]   ;;  %v5654_v12 = vld [vmem:[#allocation7 + $0xf6c] ss:$16 sps:$4 sm:$0xff]  }
 0x21c   : > { %3694 = vmatpush1.bf16.msra.mxu0 %v5559_v13  ;;  %4038 = vmatpush1.bf16.msra.mxu1 %v5562_v16  ;;  %v5649_v13 = vld [vmem:[#allocation7 + $0xf60] ss:$16 sps:$4 sm:$0xff]   ;;  %v5652_v16 = vld [vmem:[#allocation7 + $0xf68] ss:$16 sps:$4 sm:$0xff]  }
 0x21d   : > { %3695 = vmatprep.subr.bf16.mxu0 %v5567_v17  ;;  %4039 = vmatprep.subr.bf16.mxu1 %v5570_v20  ;;  %v5657_v17 = vld [vmem:[#allocation7 + $0xf84] ss:$16 sps:$4 sm:$0xff]   ;;  %v5660_v20 = vld [vmem:[#allocation7 + $0xf8c] ss:$16 sps:$4 sm:$0xff]  }
 0x220   : > { %3696 = vmatpush1.bf16.msra.mxu0 %v5565_v22  ;;  %4040 = vmatpush1.bf16.msra.mxu1 %v5568_v24  ;;  %v5655_v22 = vld [vmem:[#allocation7 + $0xf80] ss:$16 sps:$4 sm:$0xff]   ;;  %v5658_v24 = vld [vmem:[#allocation7 + $0xf88] ss:$16 sps:$4 sm:$0xff]  }
 0x221   : > { %3697 = vmatprep.subr.bf16.mxu0 %v5573_v14  ;;  %4041 = vmatprep.subr.bf16.mxu1 %v5576_v15  ;;  %v5663_v14 = vld [vmem:[#allocation7 + $0xfa4] ss:$16 sps:$4 sm:$0xff]   ;;  %v5666_v15 = vld [vmem:[#allocation7 + $0xfac] ss:$16 sps:$4 sm:$0xff]  }
 0x224   : > { %3698 = vmatpush1.bf16.msra.mxu0 %v5571_v27  ;;  %4042 = vmatpush1.bf16.msra.mxu1 %v5574_v28  ;;  %v5661_v27 = vld [vmem:[#allocation7 + $0xfa0] ss:$16 sps:$4 sm:$0xff]   ;;  %v5664_v28 = vld [vmem:[#allocation7 + $0xfa8] ss:$16 sps:$4 sm:$0xff]  }
 0x225   : > { %3699 = vmatprep.subr.bf16.mxu0 %v5579_v18  ;;  %4043 = vmatprep.subr.bf16.mxu1 %v5582_v19  ;;  %v5669_v18 = vld [vmem:[#allocation7 + $0xfc4] ss:$16 sps:$4 sm:$0xff]   ;;  %v5672_v19 = vld [vmem:[#allocation7 + $0xfcc] ss:$16 sps:$4 sm:$0xff]  }
 0x228   : > { %3700 = vmatpush1.bf16.msra.mxu0 %v5577_v29  ;;  %4044 = vmatpush1.bf16.msra.mxu1 %v5580_v32  ;;  %v5667_v29 = vld [vmem:[#allocation7 + $0xfc0] ss:$16 sps:$4 sm:$0xff]   ;;  %v5670_v32 = vld [vmem:[#allocation7 + $0xfc8] ss:$16 sps:$4 sm:$0xff]  }
 0x229   : > { %3712 = vmatprep.subr.bf16.mxu0 %v5585_v21  ;;  %4056 = vmatprep.subr.bf16.mxu1 %v5588_v23  ;;  %v5675_v21 = vld [vmem:[#allocation7 + $0xfe4] ss:$16 sps:$4 sm:$0xff]   ;;  %v5678_v23 = vld [vmem:[#allocation7 + $0xfec] ss:$16 sps:$4 sm:$0xff]  }
 0x22b   : > { %3702 = vmatmul.mubr.bf16.vlgmr.msra.gmra.mrb[0].mxu0 %v4248_v33  ;;  %4046 = vmatmul.mubr.bf16.vlgmr.msra.gmra.mrb[0].mxu1 %v4248_v33  ;;  %v5673_v33 = vld [vmem:[#allocation7 + $0xfe0] ss:$16 sps:$4 sm:$0xff]  }
 0x22c   : > { %3713 = vmatpush1.bf16.msra.mxu0 %v5583_v26  ;;  %4057 = vmatpush1.bf16.msra.mxu1 %v5586_v35  ;;  %v5676_v26 = vld [vmem:[#allocation7 + $0xfe8] ss:$16 sps:$4 sm:$0xff]   ;;  %v4250_v35 = vcombine.low %v6121_v34, %v6124_v25 }
 0x22d   : > { %3714 = vmatprep.subr.bf16.mxu0 %v5591_v36  ;;  %4058 = vmatprep.subr.bf16.mxu1 %v5594_v37  ;;  %v751_v36 = vlaneseq }
 0x22e   : > { %3744 = vmatprep.mubr.bf16.mxu0 %v4251_v38  ;;  %4088 = vmatprep.mubr.bf16.mxu1 %v4251_v38 }
 0x22f   : > { %v752_v37 = vshrl.u32 %v751_v36, 7 }
 0x230   : > { %3715 = vmatpush1.bf16.msra.mxu0 %v5589_v30  ;;  %4059 = vmatpush1.bf16.msra.mxu1 %v5592_v31  ;;  %v749_v31 = vld [vmem:[#allocation9] sm:$0xf] }
 0x231   : > { %3716 = vmatprep.subr.bf16.mxu0 %v5597_v39  ;;  %4060 = vmatprep.subr.bf16.mxu1 %v5600_v40  ;;  %v753_v38 = vsub.s32 0, %v752_v37  ;;  %v761_v30 = vsub.s32 2, %v752_v37  ;;  %v757_v39 = vsub.s32 1, %v752_v37  ;;  %v765_v40 = vsub.s32 3, %v752_v37 }
 0x234   : > { %3717 = vmatpush1.bf16.msra.mxu0 %v5595_v41  ;;  %4061 = vmatpush1.bf16.msra.mxu1 %v5598_v42  ;;  %v754_v41 = vrot.slane %v749_v31, %v753_v38  ;;  %v762_v42 = vrot.slane %v749_v31, %v761_v30 }
 0x235   : > { %3718 = vmatprep.subr.bf16.mxu0 %v5603_v43  ;;  %4062 = vmatprep.subr.bf16.mxu1 %v5606_v44  ;;  %v758_v43 = vrot.slane %v749_v31, %v757_v39  ;;  %v766_v44 = vrot.slane %v749_v31, %v765_v40 }
 0x238   : > { %3719 = vmatpush1.bf16.msra.mxu0 %v5601_v45  ;;  %4063 = vmatpush1.bf16.msra.mxu1 %v5604_v46 }
 0x239   : > { %3720 = vmatprep.subr.bf16.mxu0 %v5609_v47  ;;  %4064 = vmatprep.subr.bf16.mxu1 %v5612_v48 }
 0x23c   : > { %3721 = vmatpush1.bf16.msra.mxu0 %v5607_v49  ;;  %4065 = vmatpush1.bf16.msra.mxu1 %v5610_v50 }
 0x23d   : > { %3722 = vmatprep.subr.bf16.mxu0 %v5615_v51  ;;  %4066 = vmatprep.subr.bf16.mxu1 %v5618_v52 }
 0x240   : > { %3723 = vmatpush1.bf16.msra.mxu0 %v5613_v53  ;;  %4067 = vmatpush1.bf16.msra.mxu1 %v5616_v54 }
 0x241   : > { %3724 = vmatprep.subr.bf16.mxu0 %v5621_v55  ;;  %4068 = vmatprep.subr.bf16.mxu1 %v5624_v56 }
 0x244   : > { %3725 = vmatpush1.bf16.msra.mxu0 %v5619_v57  ;;  %4069 = vmatpush1.bf16.msra.mxu1 %v5622_v58 }
 0x245   : > { %3726 = vmatprep.subr.bf16.mxu0 %v5627_v59  ;;  %4070 = vmatprep.subr.bf16.mxu1 %v5630_v60 }
 0x248   : > { %3727 = vmatpush1.bf16.msra.mxu0 %v5625_v61  ;;  %4071 = vmatpush1.bf16.msra.mxu1 %v5628_v62 }
 0x249   : > { %3728 = vmatprep.subr.bf16.mxu0 %v5633_v63  ;;  %4072 = vmatprep.subr.bf16.mxu1 %v5636_v0 }
 0x24c   : > { %3729 = vmatpush1.bf16.msra.mxu0 %v5631_v1  ;;  %4073 = vmatpush1.bf16.msra.mxu1 %v5634_v2 }
 0x24d   : > { %3730 = vmatprep.subr.bf16.mxu0 %v5639_v3  ;;  %4074 = vmatprep.subr.bf16.mxu1 %v5642_v4 }
 0x250   : > { %3731 = vmatpush1.bf16.msra.mxu0 %v5637_v5  ;;  %4075 = vmatpush1.bf16.msra.mxu1 %v5640_v6 }
 0x251   : > { %3732 = vmatprep.subr.bf16.mxu0 %v5645_v7  ;;  %4076 = vmatprep.subr.bf16.mxu1 %v5648_v8 }
 0x254   : > { %3733 = vmatpush1.bf16.msra.mxu0 %v5643_v9  ;;  %4077 = vmatpush1.bf16.msra.mxu1 %v5646_v10 }
 0x255   : > { %3734 = vmatprep.subr.bf16.mxu0 %v5651_v11  ;;  %4078 = vmatprep.subr.bf16.mxu1 %v5654_v12 }
 0x258   : > { %3735 = vmatpush1.bf16.msra.mxu0 %v5649_v13  ;;  %4079 = vmatpush1.bf16.msra.mxu1 %v5652_v16 }
 0x259   : > { %3736 = vmatprep.subr.bf16.mxu0 %v5657_v17  ;;  %4080 = vmatprep.subr.bf16.mxu1 %v5660_v20 }
 0x25c   : > { %3737 = vmatpush1.bf16.msra.mxu0 %v5655_v22  ;;  %4081 = vmatpush1.bf16.msra.mxu1 %v5658_v24 }
 0x25d   : > { %3738 = vmatprep.subr.bf16.mxu0 %v5663_v14  ;;  %4082 = vmatprep.subr.bf16.mxu1 %v5666_v15 }
 0x260   : > { %3739 = vmatpush1.bf16.msra.mxu0 %v5661_v27  ;;  %4083 = vmatpush1.bf16.msra.mxu1 %v5664_v28 }
 0x261   : > { %3740 = vmatprep.subr.bf16.mxu0 %v5669_v18  ;;  %4084 = vmatprep.subr.bf16.mxu1 %v5672_v19 }
 0x264   : > { %3741 = vmatpush1.bf16.msra.mxu0 %v5667_v29  ;;  %4085 = vmatpush1.bf16.msra.mxu1 %v5670_v32 }
 0x265   : > { %3742 = vmatprep.subr.bf16.mxu0 %v5675_v21  ;;  %4086 = vmatprep.subr.bf16.mxu1 %v5678_v23 }
 0x268   : > { %3743 = vmatpush1.bf16.msra.mxu0 %v5673_v33  ;;  %4087 = vmatpush1.bf16.msra.mxu1 %v5676_v26 }
 0x26b   : > { %3745 = vmatmul.mubr.bf16.vlgmr.msra.gmra.mrb[0].mxu0 %v4250_v35  ;;  %4089 = vmatmul.mubr.bf16.vlgmr.msra.gmra.mrb[0].mxu1 %v4250_v35 }
 0x33e   : > { %v3746_v45 = vpop.f32.mrb[0].mxu0  ;;  %v4090_v46 = vpop.f32.mrb[0].mxu1 }
 0x33f   : > { %v4774_v34 = vadd.f32 %v3746_v45, %v754_v41  ;;  %v4778_v25 = vadd.f32 %v4090_v46, %v762_v42  ;;  %v3748_v47 = vpop.f32.mrb[1].mxu0  ;;  %v4092_v48 = vpop.f32.mrb[1].mxu1 }
 0x340   : > { %v4775_v49 = vadd.f32 %v3748_v47, %v758_v43  ;;  %v4779_v50 = vadd.f32 %v4092_v48, %v766_v44  ;;  %v3750_v51 = vpop.f32.mrb[2].mxu0  ;;  %v4094_v52 = vpop.f32.mrb[2].mxu1 }
 0x341   : > { %v4099_v53 = vmax.f32 %v4774_v34, 0.0  ;;  %v4101_v54 = vmax.f32 %v4778_v25, 0.0  ;;  %v4776_v55 = vadd.f32 %v3750_v51, %v754_v41  ;;  %v4780_v56 = vadd.f32 %v4094_v52, %v762_v42  ;;  %v3752_v57 = vpop.f32.mrb[3].mxu0  ;;  %v4096_v58 = vpop.f32.mrb[3].mxu1 }
 0x342   : > { %v4100_v59 = vmax.f32 %v4775_v49, 0.0  ;;  %v4102_v60 = vmax.f32 %v4779_v50, 0.0  ;;  %v4777_v61 = vadd.f32 %v3752_v57, %v758_v43  ;;  %v4781_v62 = vadd.f32 %v4096_v58, %v766_v44 }
 0x343   : > { %4107 = vst [vmem:[%s6131_s22] sm:$0xff] %v4099_v53  ;;  %4109 = vst [vmem:[%s6131_s22 + $0x10] sm:$0xff] %v4101_v54  ;;  %v4103_v63 = vmax.f32 %v4776_v55, 0.0  ;;  %v4105_v0 = vmax.f32 %v4780_v56, 0.0 }
 0x344   : > { %4108 = vst [vmem:[%s6131_s22 + $0x8] sm:$0xff] %v4100_v59  ;;  %4110 = vst [vmem:[%s6131_s22 + $0x18] sm:$0xff] %v4102_v60  ;;  %v4104_v1 = vmax.f32 %v4777_v61, 0.0  ;;  %v4106_v2 = vmax.f32 %v4781_v62, 0.0 }
 0x345   : > { %4111 = vst [vmem:[%s6131_s22 + $0x20] sm:$0xff] %v4103_v63  ;;  %4113 = vst [vmem:[%s6131_s22 + $0x30] sm:$0xff] %v4105_v0 }
 0x346   : > { %4112 = vst [vmem:[%s6131_s22 + $0x28] sm:$0xff] %v4104_v1  ;;  %4114 = vst [vmem:[%s6131_s22 + $0x38] sm:$0xff] %v4106_v2 }
 0x347   : > { %5778 = shalt.err (!%p5775_p2)
}
 0x348   : > { %s5779_s13 = scalar_lea.hbm %s6142_s29, 1024  ;;  %s5783_s24 = scalar_lea.hbm %s6196_s4, 2048 }
 0x349   : > { %p5780_p13 = scmp.ne.s32.totalorder %s6142_s29, %s5779_s13  ;;  %p5784_p4 = scmp.lt.u32.totalorder %s6142_s29, %s6196_s4 }
 0x34a   : > { %p5785_p5 = scmp.lt.u32.totalorder %s5783_s24, %s5779_s13  ;;  %p5787_p11 = scmp.lt.u32.totalorder %s5779_s13, %s6142_s29 }
 0x34b   : > { %p5781_p6 = pnand %p5780_p13, %p6210_p0 }
 0x34c   : > { %p5786_p8 = por %p5785_p5, %p5784_p4 }
 0x34d   : > { %p5782_p10 = pneg %p5781_p6 }
 0x34e   : > { %p5788_p1 = por %p5787_p11, %p5786_p8 }
 0x350   : > { %p5789_p3 = pnand %p5788_p1, %p5782_p10 }
 0x352   : > { %5792 = shalt.err (!%p5789_p3)
}
 0x353   : > { %s5845_s20 = smov 512   ;;  %s5846_s22 = smov 32  }
 0x354   : > { %4848 = dma.vmem_to_hbm [thread:$0]  (%p6210_p0), %s6135_s19, 1024, %s6142_s29, %s4116_s25, %s5845_s20, %s5845_s20, %s5846_s22  }
 0x355 PF: > { %s4145_s26 = sand.u32 1, %s5823_s15   ;;  %p6211_p7 = scmp.ne.s32.totalorder %s6201_s21, 0 }
 0x356   : > { %p6212_p9 = scmp.ge.s32.totalorder %s5835_s17, 2  ;;  %s4146_s18 = scalar_lea.sflag [#allocation6], %s4145_s26 }
 0x358   : > { %p4862_p12 = pnand %p6212_p9, %p6211_p7 }
 0x35a   : > { %5818 = dma.done.wait (!%p4862_p12), %s4146_s18, 1024  }
 0x35b   : > { %5820 = vsyncadd (!%p4862_p12), %s4146_s18, 4294966272  ;;  %p19_p2 = scmp.ge.s32.totalorder %s5982_s7, 4   ;;  %s6213_s15 = smov %s5827_s0 }
 0x35c   : > { %s6214_s0 = smov %s5831_s16  ;;  %s6215_s16 = smov %s5998_s10 }
 0x35d   : > { %s6216_s17 = smov %s5982_s7  ;;  %21 = sbr.rel (!%p19_p2) target bundleno = 6 (0x6), region = 85 }
 0x364   :  { %4151 = vsyncpa [#allocation5], 1 }
 0x365   :  { %4153 = vsyncpa [#allocation5 + $0x1], 1 }
 0x366   :  { %4154 = vsyncpa [#allocation8], 1 }
 0x367   :  { %4155 = vsyncpa [#allocation6], 1 }
 0x368   :  { %4157 = vsyncpa [#allocation6 + $0x1], 1 }

</bundles_post_ra>
